<compile_context>
chip_gen: v6e
topology: v6e:2x2x1
jax: 0.10.0
libtpu: 0.0.40
codegen_flags: <defaults>
</compile_context>

<pallas_src>
import jax
import jax.numpy as jnp
from jax import lax
from jax.experimental import pallas as pl
from jax.experimental.pallas import tpu as pltpu

# ----------------------------- configuration ------------------------------
IMG_SIZE = 32             # config.DATA.IMG_SIZE (small synthetic size)
PATCH = 8                 # stand-in backbone downsample factor
BATCH = 2                 # batch
C_CNN = 64                # stand-in "resnet50" feature channels
C_SWIN = 32               # stand-in "swin" feature channels
C_IN = C_CNN + C_SWIN     # 96 (lazy-initialized fusion conv input channels)
C_IN_PAD = 128            # lane-aligned K for the fusion matmul
C_FUSED = 512             # fusion conv output channels
N_PROTO = 50              # num_prototypes
N_PROTO_PAD = 128         # lane-aligned prototype axis
PROTO_DIM = 512           # prototype_dim
HIDDEN = 256              # classifier hidden
NUM_CLASSES = 14
NUM_CLASSES_PAD = 128     # lane-dense logits store (sliced back outside)
COMBINED = C_FUSED + N_PROTO_PAD   # 640: fused classifier W1 rows
H_F = IMG_SIZE // PATCH
W_F = IMG_SIZE // PATCH
S = H_F * W_F             # flattened spatial size (16)
BS = BATCH * S            # batch folded into the matmul M dimension (32)
EPS = 1e-4                # prototype similarity epsilon


def _numel(shape):
    n = 1
    for d in shape:
        n *= int(d)
    return n


# ------------------------------ Pallas kernel ------------------------------
def hybrid_head_kernel(xcat_ref, wf_ref, bf_ref, proto_ref, psq_ref,
                       w1_hbm_ref, b1_ref, w2_ref, b2_ref,
                       fused_ref, actmap_ref, sims_ref, pooled_ref, logits_ref,
                       w1_vmem, w1_sem):
    """Whole batch in one invocation.

    xcat_ref   : (BS, C_IN_PAD) f32       concatenated cnn+swin features (zero-padded K)
    wf_ref     : (C_IN_PAD, C_FUSED) bf16 1x1 fusion conv weight (transposed, zero-padded)
    bf_ref     : (1, C_FUSED) f32         fusion conv bias
    proto_ref  : (N_PROTO_PAD, PROTO_DIM) bf16  zero-padded prototypes
    psq_ref    : (1, N_PROTO_PAD) f32     prototype squared norms (from bf16-rounded protos)
    w1_hbm_ref : (COMBINED, HIDDEN) bf16  fused classifier W1, left in HBM (manual DMA)
    b1_ref     : (1, HIDDEN) f32
    w2_ref     : (HIDDEN, NUM_CLASSES_PAD) bf16  zero-padded columns
    b2_ref     : (1, NUM_CLASSES_PAD) f32
    """
    # ---- kick off the classifier-weight DMA; it overlaps the fusion/prototype stage
    w1_copy = pltpu.make_async_copy(w1_hbm_ref, w1_vmem, w1_sem)
    w1_copy.start()

    # ---- fusion: Conv2d(C_IN, 512, kernel_size=1) == channel matmul, all batch rows at once
    x_bf = xcat_ref[...].astype(jnp.bfloat16)                       # (BS, C_IN_PAD)
    fused = (jnp.dot(x_bf, wf_ref[...], preferred_element_type=jnp.float32)
             + bf_ref[...])                                         # (BS, C_FUSED) f32
    fused_bf = fused.astype(jnp.bfloat16)
    fused_ref[...] = fused_bf

    # ---- PrototypeLayer: squared L2 distance -> log-similarity
    # f_sq is computed from the SAME bf16-rounded values as the MXU cross-term,
    # and psq was built from bf16-rounded prototypes -> consistent expansion.
    f_r = fused_bf.astype(jnp.float32)
    f_sq = jnp.sum(f_r * f_r, axis=-1, keepdims=True)               # (BS, 1) f32
    cross = lax.dot_general(fused_bf, proto_ref[...],
                            (((1,), (1,)), ((), ())),
                            preferred_element_type=jnp.float32)     # (BS, N_PROTO_PAD)
    dist = jnp.maximum(f_sq - 2.0 * cross + psq_ref[...], 0.0)      # (BS, N_PROTO_PAD)
    # log((d+1)/(d+eps)) == log(d+1) - log(d+eps): two EUP logs, no VALU divide
    act = jnp.log(dist + 1.0) - jnp.log(dist + EPS)
    actmap_ref[...] = act

    # ---- per-batch reductions: global max pool (similarities) / adaptive avg pool
    # reshape + axis=1 reduce (no slice/concat relayouts on the serial tail)
    sims = jnp.max(act.reshape(BATCH, S, N_PROTO_PAD), axis=1)      # (BATCH, N_PROTO_PAD)
    pooled = jnp.mean(fused.reshape(BATCH, S, C_FUSED), axis=1)     # (BATCH, C_FUSED) f32
    sims_ref[...] = sims
    pooled_ref[...] = pooled

    # ---- classifier: Linear(512+50 -> 256) -> ReLU -> Dropout(id) -> Linear(256 -> 14)
    # single fused W1 matmul over concat(pooled, sims); padded W1 rows / W2 cols are zero.
    w1_copy.wait()
    combined = jnp.concatenate([pooled, sims], axis=-1).astype(jnp.bfloat16)  # (BATCH, 640)
    h = (jnp.dot(combined, w1_vmem[...], preferred_element_type=jnp.float32)
         + b1_ref[...])                                             # (BATCH, HIDDEN)
    h = jnp.maximum(h, 0.0).astype(jnp.bfloat16)
    logits_ref[...] = (jnp.dot(h, w2_ref[...], preferred_element_type=jnp.float32)
                       + b2_ref[...])                               # (BATCH, NUM_CLASSES_PAD)


def _full(shape):
    nd = len(shape)
    return pl.BlockSpec(tuple(shape), lambda i, _nd=nd: (0,) * _nd)


def _nbytes(x):
    return int(x.size) * jnp.dtype(x.dtype).itemsize


@jax.jit
def hybrid_head(xcat, wf_bf, b_fusion, proto_bf, psq, w1_bf, b1, w2_bf, b2):
    """xcat: (B, S, C_IN) f32 -> (fused, actmap, sims, pooled, logits)."""
    # only the activation tensor is padded per call; all weights are pre-padded bf16
    xcat_p = jnp.pad(xcat, ((0, 0), (0, 0), (0, C_IN_PAD - C_IN))).reshape(BS, C_IN_PAD)

    in_arrays = (xcat_p, wf_bf, b_fusion, proto_bf, psq, w1_bf, b1, w2_bf, b2)

    out_shape = (
        jax.ShapeDtypeStruct((BS, C_FUSED), jnp.bfloat16),           # fused features (bf16 writeback)
        jax.ShapeDtypeStruct((BS, N_PROTO_PAD), jnp.float32),        # activation maps
        jax.ShapeDtypeStruct((BATCH, N_PROTO_PAD), jnp.float32),     # similarities
        jax.ShapeDtypeStruct((BATCH, C_FUSED), jnp.float32),         # pooled
        jax.ShapeDtypeStruct((BATCH, NUM_CLASSES_PAD), jnp.float32), # logits (lane-dense)
    )

    in_specs = [_full(a.shape) for a in in_arrays]
    in_specs[5] = pl.BlockSpec(memory_space=pl.ANY)   # w1_bf: manual DMA overlapped with compute

    grid_spec = pltpu.PrefetchScalarGridSpec(
        num_scalar_prefetch=0,
        grid=(1,),                       # batch collapsed: single grid step
        in_specs=in_specs,
        out_specs=[_full(s.shape) for s in out_shape],
        scratch_shapes=[
            pltpu.VMEM((COMBINED, HIDDEN), jnp.bfloat16),   # classifier W1 landing buffer
            pltpu.SemaphoreType.DMA,                        # its DMA semaphore
        ],
    )

    flops = (2 * BS * C_IN_PAD * C_FUSED                # fusion matmul
             + 2 * BS * PROTO_DIM * N_PROTO_PAD         # prototype cross-term
             + 2 * BATCH * COMBINED * HIDDEN            # fused classifier W1
             + 2 * BATCH * HIDDEN * NUM_CLASSES_PAD)    # classifier W2
    transcendentals = 2 * BS * N_PROTO_PAD              # two logs per activation element
    bytes_accessed = (sum(_nbytes(a) for a in in_arrays)
                      + sum(_numel(s.shape) * jnp.dtype(s.dtype).itemsize for s in out_shape))
    cost = pl.CostEstimate(flops=flops, transcendentals=transcendentals,
                           bytes_accessed=bytes_accessed)

    fused, actmap, sims, pooled, logits = pl.pallas_call(
        hybrid_head_kernel,
        out_shape=out_shape,
        grid_spec=grid_spec,
        cost_estimate=cost,
    )(*in_arrays)

    fused = fused.astype(jnp.float32).reshape(BATCH, S, C_FUSED)
    actmap = actmap.reshape(BATCH, S, N_PROTO_PAD)[:, :, :N_PROTO]
    sims = sims[:, :N_PROTO]
    logits = logits[:, :NUM_CLASSES]
    return fused, actmap, sims, pooled, logits


# ------------------------------ glue (plain JAX) ----------------------------
def patch_embed(x_nchw, w):
    """Deterministic stand-in backbone: non-overlapping PATCH x PATCH linear embed.

    x_nchw: (B, C, H, W) -> (B, H/PATCH, W/PATCH, C_out) (channels-last).
    """
    b, c, h, w_ = x_nchw.shape
    ph, pw = h // PATCH, w_ // PATCH
    x = x_nchw.reshape(b, c, ph, PATCH, pw, PATCH)
    x = x.transpose(0, 2, 4, 1, 3, 5).reshape(b, ph, pw, c * PATCH * PATCH)
    return x @ w


def hybrid_swin_cnn_forward(x, params):
    """Full forward pass. x: (B, 3, IMG_SIZE, IMG_SIZE) in NCHW (PyTorch convention)."""
    # --- stand-in backbones (glue; see TODO(synk) at top of file) ---
    cnn_feat = patch_embed(x, params["w_cnn_stem"])    # (B, H_F, W_F, C_CNN)
    # swin path: input already at IMG_SIZE -> no F.interpolate of the input
    swin_feat = patch_embed(x, params["w_swin_stem"])  # (B, H_F, W_F, C_SWIN)
    # F.interpolate(swin_features, size=cnn_features.shape[2:]) -> same size here (identity)

    # torch.cat([cnn, swin], dim=1)  (channel concat, here channels-last)
    xcat = jnp.concatenate([cnn_feat, swin_feat], axis=-1)          # (B, H_F, W_F, C_IN)
    xcat = xcat.reshape(x.shape[0], S, C_IN)                        # (B, S, C_IN)

    fused, actmap, sims, pooled, logits = hybrid_head(
        xcat, params["wf_bf"], params["b_fusion"], params["proto_bf"], params["psq"],
        params["w1_bf"], params["b1"], params["w2_bf"], params["b2"])

    batch = x.shape[0]
    # back to PyTorch NCHW conventions
    features_nchw = fused.reshape(batch, H_F, W_F, C_FUSED).transpose(0, 3, 1, 2)
    actmap_nchw = actmap.transpose(0, 2, 1).reshape(batch, N_PROTO, H_F, W_F)

    return {
        "logits": logits,                              # (B, 14)
        "prototype_similarities": sims,                # (B, 50)
        "prototype_activations": actmap_nchw,          # (B, 50, H_F, W_F)
        "features": features_nchw,                     # (B, 512, H_F, W_F)
        "pooled_features": pooled,                     # (B, 512) (intermediate)
    }


def init_params(key):
    ks = jax.random.split(key, 9)
    n = lambda k, shape, scale: (scale * jax.random.normal(k, shape)).astype(jnp.float32)

    w_fusion = n(ks[2], (C_IN, C_FUSED), 0.05)       # Conv2d(C_IN,512,1) weight^T
    prototypes = n(ks[4], (N_PROTO, PROTO_DIM), 0.05)
    w1a = n(ks[5], (C_FUSED, HIDDEN), 0.05)          # Linear(562,256): pooled-feature rows
    w1b = n(ks[6], (N_PROTO, HIDDEN), 0.05)          #                : similarity rows
    w2 = n(ks[8], (HIDDEN, NUM_CLASSES), 0.05)

    # --- pre-pad + pre-cast the static weights ONCE (per perf review) ---
    wf_bf = jnp.pad(w_fusion, ((0, C_IN_PAD - C_IN), (0, 0))).astype(jnp.bfloat16)
    proto_bf = jnp.pad(prototypes, ((0, N_PROTO_PAD - N_PROTO), (0, 0))).astype(jnp.bfloat16)
    # prototype squared norms from the SAME bf16-rounded values the MXU cross-term sees
    psq = jnp.sum(proto_bf.astype(jnp.float32) ** 2, axis=-1, keepdims=True).T  # (1, N_PROTO_PAD)
    # fused classifier W1: [pooled rows ; zero-padded similarity rows] -> (COMBINED, HIDDEN)
    w1_bf = jnp.concatenate(
        [w1a, jnp.pad(w1b, ((0, N_PROTO_PAD - N_PROTO), (0, 0)))], axis=0
    ).astype(jnp.bfloat16)
    # W2/b2 padded to 128 output lanes for an unmasked final store
    w2_bf = jnp.pad(w2, ((0, 0), (0, NUM_CLASSES_PAD - NUM_CLASSES))).astype(jnp.bfloat16)
    b2 = jnp.zeros((1, NUM_CLASSES_PAD), jnp.float32)

    return {
        "w_cnn_stem": n(ks[0], (3 * PATCH * PATCH, C_CNN), 0.05),
        "w_swin_stem": n(ks[1], (3 * PATCH * PATCH, C_SWIN), 0.05),
        "wf_bf": wf_bf,
        "b_fusion": n(ks[3], (1, C_FUSED), 0.05),
        "proto_bf": proto_bf,
        "psq": psq,
        "w1_bf": w1_bf,
        "b1": n(ks[7], (1, HIDDEN), 0.05),
        "w2_bf": w2_bf,
        "b2": b2,
    }


if __name__ == "__main__":
    key = jax.random.PRNGKey(0)
    k_x, k_p = jax.random.split(key)
    x = jax.random.normal(k_x, (BATCH, 3, IMG_SIZE, IMG_SIZE), dtype=jnp.float32)
    params = init_params(k_p)

    out = hybrid_swin_cnn_forward(x, params)
    jax.block_until_ready(out)

    assert out["logits"].shape == (BATCH, NUM_CLASSES)
    assert out["prototype_similarities"].shape == (BATCH, N_PROTO)
    assert out["prototype_activations"].shape == (BATCH, N_PROTO, H_F, W_F)
    assert out["features"].shape == (BATCH, C_FUSED, H_F, W_F)
    assert out["pooled_features"].shape == (BATCH, C_FUSED)
    assert bool(jnp.all(jnp.isfinite(out["logits"])))
    print("KERNEL_OK")
</pallas_src>

<mosaic_0001>
module attributes {stable_mosaic.version = 11 : i64} {
  func.func @hybrid_head_kernel(%arg0: i32, %arg1: memref<32x128xf32, #tpu.memory_space<vmem>>, %arg2: memref<128x512xbf16, #tpu.memory_space<vmem>>, %arg3: memref<1x512xf32, #tpu.memory_space<vmem>>, %arg4: memref<128x512xbf16, #tpu.memory_space<vmem>>, %arg5: memref<1x128xf32, #tpu.memory_space<vmem>>, %arg6: memref<640x256xbf16, #tpu.memory_space<any>>, %arg7: memref<1x256xf32, #tpu.memory_space<vmem>>, %arg8: memref<256x128xbf16, #tpu.memory_space<vmem>>, %arg9: memref<1x128xf32, #tpu.memory_space<vmem>>, %arg10: memref<32x512xbf16, #tpu.memory_space<vmem>>, %arg11: memref<32x128xf32, #tpu.memory_space<vmem>>, %arg12: memref<2x128xf32, #tpu.memory_space<vmem>>, %arg13: memref<2x512xf32, #tpu.memory_space<vmem>>, %arg14: memref<2x128xf32, #tpu.memory_space<vmem>>, %arg15: memref<640x256xbf16, #tpu.memory_space<vmem>>, %arg16: memref<!tpu.dma_semaphore, #tpu.memory_space<semaphore_mem>>) attributes {dimension_semantics = [#tpu.dimension_semantics<arbitrary>], iteration_bounds = array<i64: 1>, scalar_prefetch = 0 : i64, scratch_operands = 2 : i64, tpu.core_type = #tpu.core_type<tc>, window_params = [{pipeline_mode = #tpu.pipeline_mode<synchronous>, transform_indices = @transform_0, window_bounds = array<i64: 32, 128>}, {pipeline_mode = #tpu.pipeline_mode<synchronous>, transform_indices = @transform_1, window_bounds = array<i64: 128, 512>}, {pipeline_mode = #tpu.pipeline_mode<synchronous>, transform_indices = @transform_2, window_bounds = array<i64: 1, 512>}, {pipeline_mode = #tpu.pipeline_mode<synchronous>, transform_indices = @transform_3, window_bounds = array<i64: 128, 512>}, {pipeline_mode = #tpu.pipeline_mode<synchronous>, transform_indices = @transform_4, window_bounds = array<i64: 1, 128>}, {}, {pipeline_mode = #tpu.pipeline_mode<synchronous>, transform_indices = @transform_6, window_bounds = array<i64: 1, 256>}, {pipeline_mode = #tpu.pipeline_mode<synchronous>, transform_indices = @transform_7, window_bounds = array<i64: 256, 128>}, {pipeline_mode = #tpu.pipeline_mode<synchronous>, transform_indices = @transform_8, window_bounds = array<i64: 1, 128>}, {pipeline_mode = #tpu.pipeline_mode<synchronous>, transform_indices = @transform_9, window_bounds = array<i64: 32, 512>}, {pipeline_mode = #tpu.pipeline_mode<synchronous>, transform_indices = @transform_10, window_bounds = array<i64: 32, 128>}, {pipeline_mode = #tpu.pipeline_mode<synchronous>, transform_indices = @transform_11, window_bounds = array<i64: 2, 128>}, {pipeline_mode = #tpu.pipeline_mode<synchronous>, transform_indices = @transform_12, window_bounds = array<i64: 2, 512>}, {pipeline_mode = #tpu.pipeline_mode<synchronous>, transform_indices = @transform_13, window_bounds = array<i64: 2, 128>}]} {
    tpu.enqueue_dma source(%arg6 : memref<640x256xbf16, #tpu.memory_space<any>>) target(%arg15 : memref<640x256xbf16, #tpu.memory_space<vmem>>) target_semaphore(%arg16 : memref<!tpu.dma_semaphore, #tpu.memory_space<semaphore_mem>>)
    %c0 = arith.constant 0 : index
    %c0_0 = arith.constant 0 : index
    %0 = vector.load %arg1[%c0, %c0_0] : memref<32x128xf32, #tpu.memory_space<vmem>>, vector<32x128xf32>
    %1 = arith.truncf %0 : vector<32x128xf32> to vector<32x128xbf16>
    %c0_1 = arith.constant 0 : index
    %c0_2 = arith.constant 0 : index
    %2 = vector.load %arg2[%c0_1, %c0_2] : memref<128x512xbf16, #tpu.memory_space<vmem>>, vector<128x512xbf16>
    %cst = arith.constant dense<0.000000e+00> : vector<32x512xf32>
    %3 = tpu.matmul %1, %2, %cst {dimension_numbers = #tpu.dot_dimension_numbers<[1], [0], [0], [1], [0, 0, 1, 1], [], []>} : vector<32x128xbf16>, vector<128x512xbf16>, vector<32x512xf32> -> vector<32x512xf32>
    %c0_3 = arith.constant 0 : index
    %c0_4 = arith.constant 0 : index
    %4 = vector.load %arg3[%c0_3, %c0_4] : memref<1x512xf32, #tpu.memory_space<vmem>>, vector<1x512xf32>
    %5 = vector.broadcast %4 : vector<1x512xf32> to vector<32x512xf32>
    %6 = arith.addf %3, %5 : vector<32x512xf32>
    %7 = arith.truncf %6 : vector<32x512xf32> to vector<32x512xbf16>
    %c0_5 = arith.constant 0 : index
    %c0_6 = arith.constant 0 : index
    %8 = vector.load %arg10[%c0_5, %c0_6] : memref<32x512xbf16, #tpu.memory_space<vmem>>, vector<32x512xbf16>
    tpu.vector_store %arg10[%c0_5, %c0_6], %7 {strides = array<i32>} : memref<32x512xbf16, #tpu.memory_space<vmem>>, vector<32x512xbf16>,
    %9 = arith.extf %7 : vector<32x512xbf16> to vector<32x512xf32>
    %10 = arith.mulf %9, %9 : vector<32x512xf32>
    %cst_7 = arith.constant dense<0.000000e+00> : vector<32xf32>
    %11 = vector.multi_reduction <add>, %10, %cst_7 [1] : vector<32x512xf32> to vector<32xf32>
    %12 = vector.shape_cast %11 : vector<32xf32> to vector<32x1xf32>
    %c0_8 = arith.constant 0 : index
    %c0_9 = arith.constant 0 : index
    %13 = vector.load %arg4[%c0_8, %c0_9] : memref<128x512xbf16, #tpu.memory_space<vmem>>, vector<128x512xbf16>
    %cst_10 = arith.constant dense<0.000000e+00> : vector<32x128xf32>
    %14 = tpu.matmul %7, %13, %cst_10 {dimension_numbers = #tpu.dot_dimension_numbers<[1], [1], [0], [0], [0, 0, 1, 0], [], []>} : vector<32x512xbf16>, vector<128x512xbf16>, vector<32x128xf32> -> vector<32x128xf32>
    %cst_11 = arith.constant 2.000000e+00 : f32
    %15 = vector.broadcast %cst_11 : f32 to vector<32x128xf32>
    %16 = arith.mulf %15, %14 : vector<32x128xf32>
    %17 = vector.broadcast %12 : vector<32x1xf32> to vector<32x128xf32>
    %18 = arith.subf %17, %16 : vector<32x128xf32>
    %c0_12 = arith.constant 0 : index
    %c0_13 = arith.constant 0 : index
    %19 = vector.load %arg5[%c0_12, %c0_13] : memref<1x128xf32, #tpu.memory_space<vmem>>, vector<1x128xf32>
    %20 = vector.broadcast %19 : vector<1x128xf32> to vector<32x128xf32>
    %21 = arith.addf %18, %20 : vector<32x128xf32>
    %cst_14 = arith.constant 0.000000e+00 : f32
    %22 = vector.broadcast %cst_14 : f32 to vector<32x128xf32>
    %23 = arith.maximumf %21, %22 : vector<32x128xf32>
    %cst_15 = arith.constant 1.000000e+00 : f32
    %24 = vector.broadcast %cst_15 : f32 to vector<32x128xf32>
    %25 = arith.addf %23, %24 : vector<32x128xf32>
    %26 = math.log %25 : vector<32x128xf32>
    %cst_16 = arith.constant 9.99999974E-5 : f32
    %27 = vector.broadcast %cst_16 : f32 to vector<32x128xf32>
    %28 = arith.addf %23, %27 : vector<32x128xf32>
    %29 = math.log %28 : vector<32x128xf32>
    %30 = arith.subf %26, %29 : vector<32x128xf32>
    %c0_17 = arith.constant 0 : index
    %c0_18 = arith.constant 0 : index
    %31 = vector.load %arg11[%c0_17, %c0_18] : memref<32x128xf32, #tpu.memory_space<vmem>>, vector<32x128xf32>
    tpu.vector_store %arg11[%c0_17, %c0_18], %30 {strides = array<i32>} : memref<32x128xf32, #tpu.memory_space<vmem>>, vector<32x128xf32>,
    %32 = vector.shape_cast %30 : vector<32x128xf32> to vector<2x16x128xf32>
    %cst_19 = arith.constant dense<0xFF800000> : vector<2x128xf32>
    %33 = vector.multi_reduction <maximumf>, %32, %cst_19 [1] : vector<2x16x128xf32> to vector<2x128xf32>
    %34 = vector.shape_cast %6 : vector<32x512xf32> to vector<2x16x512xf32>
    %cst_20 = arith.constant dense<0.000000e+00> : vector<2x512xf32>
    %35 = vector.multi_reduction <add>, %34, %cst_20 [1] : vector<2x16x512xf32> to vector<2x512xf32>
    %cst_21 = arith.constant 1.600000e+01 : f32
    %36 = vector.broadcast %cst_21 : f32 to vector<2x512xf32>
    %37 = arith.divf %35, %36 : vector<2x512xf32>
    %c0_22 = arith.constant 0 : index
    %c0_23 = arith.constant 0 : index
    %38 = vector.load %arg12[%c0_22, %c0_23] : memref<2x128xf32, #tpu.memory_space<vmem>>, vector<2x128xf32>
    tpu.vector_store %arg12[%c0_22, %c0_23], %33 {strides = array<i32>} : memref<2x128xf32, #tpu.memory_space<vmem>>, vector<2x128xf32>,
    %c0_24 = arith.constant 0 : index
    %c0_25 = arith.constant 0 : index
    %39 = vector.load %arg13[%c0_24, %c0_25] : memref<2x512xf32, #tpu.memory_space<vmem>>, vector<2x512xf32>
    tpu.vector_store %arg13[%c0_24, %c0_25], %37 {strides = array<i32>} : memref<2x512xf32, #tpu.memory_space<vmem>>, vector<2x512xf32>,
    tpu.wait_dma2 semaphore(%arg16 : memref<!tpu.dma_semaphore, #tpu.memory_space<semaphore_mem>>) src(%arg6 : memref<640x256xbf16, #tpu.memory_space<any>>) dst(%arg15 : memref<640x256xbf16, #tpu.memory_space<vmem>>)
    %40 = tpu.concatenate %37, %33 in 1 : vector<2x512xf32>, vector<2x128xf32> -> vector<2x640xf32>
    %41 = arith.truncf %40 : vector<2x640xf32> to vector<2x640xbf16>
    %c0_26 = arith.constant 0 : index
    %c0_27 = arith.constant 0 : index
    %42 = vector.load %arg15[%c0_26, %c0_27] : memref<640x256xbf16, #tpu.memory_space<vmem>>, vector<640x256xbf16>
    %cst_28 = arith.constant dense<0.000000e+00> : vector<2x256xf32>
    %43 = tpu.matmul %41, %42, %cst_28 {dimension_numbers = #tpu.dot_dimension_numbers<[1], [0], [0], [1], [0, 0, 1, 1], [], []>} : vector<2x640xbf16>, vector<640x256xbf16>, vector<2x256xf32> -> vector<2x256xf32>
    %c0_29 = arith.constant 0 : index
    %c0_30 = arith.constant 0 : index
    %44 = vector.load %arg7[%c0_29, %c0_30] : memref<1x256xf32, #tpu.memory_space<vmem>>, vector<1x256xf32>
    %45 = vector.broadcast %44 : vector<1x256xf32> to vector<2x256xf32>
    %46 = arith.addf %43, %45 : vector<2x256xf32>
    %cst_31 = arith.constant 0.000000e+00 : f32
    %47 = vector.broadcast %cst_31 : f32 to vector<2x256xf32>
    %48 = arith.maximumf %46, %47 : vector<2x256xf32>
    %49 = arith.truncf %48 : vector<2x256xf32> to vector<2x256xbf16>
    %c0_32 = arith.constant 0 : index
    %c0_33 = arith.constant 0 : index
    %50 = vector.load %arg8[%c0_32, %c0_33] : memref<256x128xbf16, #tpu.memory_space<vmem>>, vector<256x128xbf16>
    %cst_34 = arith.constant dense<0.000000e+00> : vector<2x128xf32>
    %51 = tpu.matmul %49, %50, %cst_34 {dimension_numbers = #tpu.dot_dimension_numbers<[1], [0], [0], [1], [0, 0, 1, 1], [], []>} : vector<2x256xbf16>, vector<256x128xbf16>, vector<2x128xf32> -> vector<2x128xf32>
    %c0_35 = arith.constant 0 : index
    %c0_36 = arith.constant 0 : index
    %52 = vector.load %arg9[%c0_35, %c0_36] : memref<1x128xf32, #tpu.memory_space<vmem>>, vector<1x128xf32>
    %53 = vector.broadcast %52 : vector<1x128xf32> to vector<2x128xf32>
    %54 = arith.addf %51, %53 : vector<2x128xf32>
    %c0_37 = arith.constant 0 : index
    %c0_38 = arith.constant 0 : index
    %55 = vector.load %arg14[%c0_37, %c0_38] : memref<2x128xf32, #tpu.memory_space<vmem>>, vector<2x128xf32>
    tpu.vector_store %arg14[%c0_37, %c0_38], %54 {strides = array<i32>} : memref<2x128xf32, #tpu.memory_space<vmem>>, vector<2x128xf32>,
    return
  }
  func.func @transform_0(%arg0: i32) -> (i32, i32) {
    %c0_i32 = arith.constant 0 : i32
    %c0_i32_0 = arith.constant 0 : i32
    %c0_i32_1 = arith.constant 0 : i32
    return %c0_i32, %c0_i32_0 : i32, i32
  }
  func.func @transform_1(%arg0: i32) -> (i32, i32) {
    %c0_i32 = arith.constant 0 : i32
    %c0_i32_0 = arith.constant 0 : i32
    %c0_i32_1 = arith.constant 0 : i32
    return %c0_i32, %c0_i32_0 : i32, i32
  }
  func.func @transform_2(%arg0: i32) -> (i32, i32) {
    %c0_i32 = arith.constant 0 : i32
    %c0_i32_0 = arith.constant 0 : i32
    %c0_i32_1 = arith.constant 0 : i32
    return %c0_i32, %c0_i32_0 : i32, i32
  }
  func.func @transform_3(%arg0: i32) -> (i32, i32) {
    %c0_i32 = arith.constant 0 : i32
    %c0_i32_0 = arith.constant 0 : i32
    %c0_i32_1 = arith.constant 0 : i32
    return %c0_i32, %c0_i32_0 : i32, i32
  }
  func.func @transform_4(%arg0: i32) -> (i32, i32) {
    %c0_i32 = arith.constant 0 : i32
    %c0_i32_0 = arith.constant 0 : i32
    %c0_i32_1 = arith.constant 0 : i32
    return %c0_i32, %c0_i32_0 : i32, i32
  }
  func.func @transform_6(%arg0: i32) -> (i32, i32) {
    %c0_i32 = arith.constant 0 : i32
    %c0_i32_0 = arith.constant 0 : i32
    %c0_i32_1 = arith.constant 0 : i32
    return %c0_i32, %c0_i32_0 : i32, i32
  }
  func.func @transform_7(%arg0: i32) -> (i32, i32) {
    %c0_i32 = arith.constant 0 : i32
    %c0_i32_0 = arith.constant 0 : i32
    %c0_i32_1 = arith.constant 0 : i32
    return %c0_i32, %c0_i32_0 : i32, i32
  }
  func.func @transform_8(%arg0: i32) -> (i32, i32) {
    %c0_i32 = arith.constant 0 : i32
    %c0_i32_0 = arith.constant 0 : i32
    %c0_i32_1 = arith.constant 0 : i32
    return %c0_i32, %c0_i32_0 : i32, i32
  }
  func.func @transform_9(%arg0: i32) -> (i32, i32) {
    %c0_i32 = arith.constant 0 : i32
    %c0_i32_0 = arith.constant 0 : i32
    %c0_i32_1 = arith.constant 0 : i32
    return %c0_i32, %c0_i32_0 : i32, i32
  }
  func.func @transform_10(%arg0: i32) -> (i32, i32) {
    %c0_i32 = arith.constant 0 : i32
    %c0_i32_0 = arith.constant 0 : i32
    %c0_i32_1 = arith.constant 0 : i32
    return %c0_i32, %c0_i32_0 : i32, i32
  }
  func.func @transform_11(%arg0: i32) -> (i32, i32) {
    %c0_i32 = arith.constant 0 : i32
    %c0_i32_0 = arith.constant 0 : i32
    %c0_i32_1 = arith.constant 0 : i32
    return %c0_i32, %c0_i32_0 : i32, i32
  }
  func.func @transform_12(%arg0: i32) -> (i32, i32) {
    %c0_i32 = arith.constant 0 : i32
    %c0_i32_0 = arith.constant 0 : i32
    %c0_i32_1 = arith.constant 0 : i32
    return %c0_i32, %c0_i32_0 : i32, i32
  }
  func.func @transform_13(%arg0: i32) -> (i32, i32) {
    %c0_i32 = arith.constant 0 : i32
    %c0_i32_0 = arith.constant 0 : i32
    %c0_i32_1 = arith.constant 0 : i32
    return %c0_i32, %c0_i32_0 : i32, i32
  }
}

</mosaic_0001>

<bundles_post_ra>
// kernel: hybrid_head.1
= control target key start
LH: loop header
LB: loop body
LE: loop exit
PB: predicated region body
PF: predicated region fallthrough
CT: control target
= control target key end

     0   :  { %19 = vsyncpa [#allocation5], 0  ;;  %s2846_s0 = inlined_call_operand.vmem [shape: f32[32,128], index: 0, kind: input, shape index: {}]   ;;  %s2847_s1 = inlined_call_operand.hbm [shape: bf16[128,512], index: 1, kind: input, shape index: {}]   ;;  %s2848_s2 = inlined_call_operand.vmem [shape: f32[1,512], index: 2, kind: input, shape index: {}]   ;;  %s2849_s3 = inlined_call_operand.hbm [shape: bf16[128,512], index: 3, kind: input, shape index: {}]   ;;  %s2850_s4 = inlined_call_operand.vmem [shape: f32[1,128], index: 4, kind: input, shape index: {}]   ;;  %s2851_s5 = inlined_call_operand.hbm [shape: bf16[640,256], index: 5, kind: input, shape index: {}]   ;;  %s2852_s6 = inlined_call_operand.vmem [shape: f32[1,256], index: 6, kind: input, shape index: {}]   ;;  %s2853_s7 = inlined_call_operand.hbm [shape: bf16[256,128], index: 7, kind: input, shape index: {}]   ;;  %s2854_s8 = inlined_call_operand.vmem [shape: f32[1,128], index: 8, kind: input, shape index: {}]   ;;  %s2855_s9 = inlined_call_operand.vmem [shape: bf16[32,512], index: 9, kind: output, shape index: {0}]   ;;  %s2856_s10 = inlined_call_operand.hbm [shape: f32[32,128], index: 10, kind: output, shape index: {1}]   ;;  %s2857_s11 = inlined_call_operand.hbm [shape: f32[2,128], index: 11, kind: output, shape index: {2}]   ;;  %s2858_s12 = inlined_call_operand.hbm [shape: f32[2,512], index: 12, kind: output, shape index: {3}]   ;;  %s2859_s13 = inlined_call_operand.hbm [shape: f32[2,128], index: 13, kind: output, shape index: {4}]  }
   0x1   :  { %20 = vsyncpa [#allocation8], 0 }
   0x2   :  { %21 = vsyncpa [#allocation6], 0 }
   0x3   :  { %22 = vsyncpa [#allocation12], 0 }
   0x4   :  { %23 = vsyncpa [#allocation15], 0  ;;  %s2569_s25 = smov [#allocation7]   ;;  %s2570_s27 = smov [#allocation4]  }
   0x5   :  { %s45_s26 = sshll.u32 %s2569_s25, 4  ;;  %s31_s28 = sshll.u32 %s2570_s27, 4  ;;  %s46_s26 = int_to_ptr.vmem [resolvable:$true] %s45_s26  ;;  %s32_s28 = int_to_ptr.vmem [resolvable:$true] %s31_s28 }
   0x6   :  { %s2365_s29 = scalar_lea.vmem %s46_s26, 4096  ;;  %p2370_p1 = scmp.lt.s32.totalorder %s46_s26, %s46_s26 }
   0x7   :  { %p2366_p0 = scmp.ne.s32.totalorder %s46_s26, %s2365_s29  ;;  %p2371_p2 = scmp.lt.s32.totalorder %s2365_s29, %s2365_s29 }
   0x9   :  { %p2372_p3 = por %p2371_p2, %p2370_p1 }
   0xb   :  { %p2373_p4 = pnand %p2372_p3, %p2366_p0 }
   0xd   :  { %2376 = shalt.err (!%p2373_p4)
}
   0xe   :  { %s2571_s30 = smov 256   ;;  %s2572_s14 = smov 16  }
   0xf   :  { %51 = dma.hbm_to_vmem [thread:$0]  %s2849_s3, 4096, %s46_s26, [#allocation8], %s2571_s30, %s2571_s30, %s2572_s14  }
  0x10   :  { %s2385_s17 = scalar_lea.vmem %s32_s28, 4096  ;;  %p2390_p6 = scmp.lt.s32.totalorder %s32_s28, %s32_s28 }
  0x11   :  { %p2386_p5 = scmp.ne.s32.totalorder %s32_s28, %s2385_s17  ;;  %p2391_p7 = scmp.lt.s32.totalorder %s2385_s17, %s2385_s17 }
  0x13   :  { %p2392_p8 = por %p2391_p7, %p2390_p6 }
  0x15   :  { %p2393_p9 = pnand %p2392_p8, %p2386_p5 }
  0x17   :  { %2396 = shalt.err (!%p2393_p9)
}
  0x18   :  { %37 = dma.hbm_to_vmem [thread:$0]  %s2847_s1, 4096, %s32_s28, [#allocation5], %s2571_s30, %s2571_s30, %s2572_s14  }
  0x19   :  { %s2573_s20 = smov [#allocation9]  }
  0x1a   :  { %s61_s21 = sshll.u32 %s2573_s20, 4  ;;  %s62_s21 = int_to_ptr.vmem [resolvable:$true] %s61_s21 }
  0x1b   :  { %s2405_s22 = scalar_lea.vmem %s62_s21, 2048  ;;  %p2410_p11 = scmp.lt.s32.totalorder %s62_s21, %s62_s21 }
  0x1c   :  { %p2406_p10 = scmp.ne.s32.totalorder %s62_s21, %s2405_s22  ;;  %p2411_p12 = scmp.lt.s32.totalorder %s2405_s22, %s2405_s22 }
  0x1e   :  { %p2412_p13 = por %p2411_p12, %p2410_p11 }
  0x20   :  { %p2413_p0 = pnand %p2412_p13, %p2406_p10 }
  0x22   :  { %2416 = shalt.err (!%p2413_p0)
}
  0x23   :  { %s2574_s3 = smov 64   ;;  %s2575_s23 = smov 4  }
  0x24   :  { %67 = dma.hbm_to_vmem [thread:$0]  %s2853_s7, 2048, %s62_s21, [#allocation8], %s2574_s3, %s2574_s3, %s2575_s23  }
  0x25   :  { %2517 = dma.done.wait [#allocation5], 4096  }
  0x26   :  { %2518 = vsyncadd [#allocation5], 4294963200 }
  0x27   :  { %2519 = dma.done.wait [#allocation8], 6144  }
  0x28   :  { %2520 = vsyncadd [#allocation8], 4294961152  ;;  %v2576_v0 = vmov 0   ;;  %v2109_v1 = vld [vmem:[#allocation4 + $0xe4] ss:$16 sps:$4 sm:$0xff]   ;;  %v92_v34 = vld [vmem:[%s2846_s0 + $0x8] sm:$0xff] }
  0x29   :  { %343 = vmatprep.mubr.bf16.mxu0 %v2576_v0  ;;  %396 = vmatprep.mubr.bf16.mxu1 %v2576_v0  ;;  %v2111_v2 = vld [vmem:[#allocation4 + $0xec] ss:$16 sps:$4 sm:$0xff]   ;;  %v2113_v3 = vld [vmem:[#allocation4 + $0xe0] ss:$16 sps:$4 sm:$0xff]   ;;  %v2114_v4 = vld [vmem:[#allocation4 + $0xe8] ss:$16 sps:$4 sm:$0xff]  }
  0x2a   :  { %311 = vmatprep.subr.bf16.mxu0 %v2109_v1  ;;  %364 = vmatprep.subr.bf16.mxu1 %v2111_v2  ;;  %v2115_v5 = vld [vmem:[#allocation4 + $0xc4] ss:$16 sps:$4 sm:$0xff]   ;;  %v2117_v6 = vld [vmem:[#allocation4 + $0xcc] ss:$16 sps:$4 sm:$0xff]   ;;  %v2119_v7 = vld [vmem:[#allocation4 + $0xc0] ss:$16 sps:$4 sm:$0xff]  }
  0x2b   :  { %312 = vmatpush1.bf16.msra.mxu0 %v2113_v3  ;;  %365 = vmatpush1.bf16.msra.mxu1 %v2114_v4  ;;  %v2120_v8 = vld [vmem:[#allocation4 + $0xc8] ss:$16 sps:$4 sm:$0xff]   ;;  %v2121_v9 = vld [vmem:[#allocation4 + $0xa4] ss:$16 sps:$4 sm:$0xff]   ;;  %v2123_v10 = vld [vmem:[#allocation4 + $0xac] ss:$16 sps:$4 sm:$0xff]  }
  0x2c   :  { %313 = vmatprep.subr.bf16.mxu0 %v2115_v5  ;;  %366 = vmatprep.subr.bf16.mxu1 %v2117_v6  ;;  %v2125_v11 = vld [vmem:[#allocation4 + $0xa0] ss:$16 sps:$4 sm:$0xff]   ;;  %v2126_v12 = vld [vmem:[#allocation4 + $0xa8] ss:$16 sps:$4 sm:$0xff]   ;;  %v2127_v13 = vld [vmem:[#allocation4 + $0x84] ss:$16 sps:$4 sm:$0xff]  }
  0x2d   :  { %v2129_v14 = vld [vmem:[#allocation4 + $0x8c] ss:$16 sps:$4 sm:$0xff]   ;;  %v2131_v15 = vld [vmem:[#allocation4 + $0x80] ss:$16 sps:$4 sm:$0xff]   ;;  %v2132_v16 = vld [vmem:[#allocation4 + $0x88] ss:$16 sps:$4 sm:$0xff]  }
  0x2e   :  { %v2133_v17 = vld [vmem:[#allocation4 + $0x64] ss:$16 sps:$4 sm:$0xff]   ;;  %v2135_v18 = vld [vmem:[#allocation4 + $0x6c] ss:$16 sps:$4 sm:$0xff]   ;;  %v2137_v19 = vld [vmem:[#allocation4 + $0x60] ss:$16 sps:$4 sm:$0xff]  }
  0x2f   :  { %314 = vmatpush1.bf16.msra.mxu0 %v2119_v7  ;;  %367 = vmatpush1.bf16.msra.mxu1 %v2120_v8  ;;  %v2138_v20 = vld [vmem:[#allocation4 + $0x68] ss:$16 sps:$4 sm:$0xff]   ;;  %v2139_v21 = vld [vmem:[#allocation4 + $0x44] ss:$16 sps:$4 sm:$0xff]   ;;  %v2141_v22 = vld [vmem:[#allocation4 + $0x4c] ss:$16 sps:$4 sm:$0xff]   ;;  %v131_v8 = vlaneseq }
  0x30   :  { %315 = vmatprep.subr.bf16.mxu0 %v2121_v9  ;;  %368 = vmatprep.subr.bf16.mxu1 %v2123_v10  ;;  %v2143_v23 = vld [vmem:[#allocation4 + $0x40] ss:$16 sps:$4 sm:$0xff]   ;;  %v2144_v24 = vld [vmem:[#allocation4 + $0x48] ss:$16 sps:$4 sm:$0xff]   ;;  %v2145_v25 = vld [vmem:[#allocation4 + $0x24] ss:$16 sps:$4 sm:$0xff]  }
  0x31   :  { %v2147_v26 = vld [vmem:[#allocation4 + $0x2c] ss:$16 sps:$4 sm:$0xff]   ;;  %v2149_v27 = vld [vmem:[#allocation4 + $0x20] ss:$16 sps:$4 sm:$0xff]   ;;  %v2150_v28 = vld [vmem:[#allocation4 + $0x28] ss:$16 sps:$4 sm:$0xff]  }
  0x32   :  { %v2151_v29 = vld [vmem:[#allocation4 + $0x4] ss:$16 sps:$4 sm:$0xff]   ;;  %v2153_v30 = vld [vmem:[#allocation4 + $0xc] ss:$16 sps:$4 sm:$0xff]   ;;  %v2155_v31 = vld [vmem:[#allocation4] ss:$16 sps:$4 sm:$0xff]  }
  0x33   :  { %316 = vmatpush1.bf16.msra.mxu0 %v2125_v11  ;;  %369 = vmatpush1.bf16.msra.mxu1 %v2126_v12  ;;  %v2156_v32 = vld [vmem:[#allocation4 + $0x8] ss:$16 sps:$4 sm:$0xff]   ;;  %v91_v33 = vld [vmem:[%s2846_s0] sm:$0xff]  ;;  %v2162_v36 = vld [vmem:[#allocation7 + $0xec] ss:$16 sps:$4 sm:$0xff]   ;;  %v2681_v9 = vshrl.u32 %v131_v8, 7 }
  0x34   :  { %317 = vmatprep.subr.bf16.mxu0 %v2127_v13  ;;  %370 = vmatprep.subr.bf16.mxu1 %v2129_v14  ;;  %v2159_v35 = vld [vmem:[#allocation7 + $0xe4] ss:$16 sps:$4 sm:$0xff]   ;;  %v95_v37 = vpack.c.bf16 %v92_v34, %v91_v33  ;;  %v2157_v38 = vld [vmem:[#allocation7 + $0xe0] ss:$16 sps:$4 sm:$0xff]   ;;  %v2160_v39 = vld [vmem:[#allocation7 + $0xe8] ss:$16 sps:$4 sm:$0xff]  }
  0x35   :  { %v2165_v40 = vld [vmem:[#allocation7 + $0xc4] ss:$16 sps:$4 sm:$0xff]   ;;  %v2168_v41 = vld [vmem:[#allocation7 + $0xcc] ss:$16 sps:$4 sm:$0xff]   ;;  %v2163_v45 = vld [vmem:[#allocation7 + $0xc0] ss:$16 sps:$4 sm:$0xff]  }
  0x36   :  { %v93_v42 = vld [vmem:[%s2846_s0 + $0x10] sm:$0xff]  ;;  %v94_v43 = vld [vmem:[%s2846_s0 + $0x18] sm:$0xff]  ;;  %v133_v10 = vsub.s32 0, %v2681_v9  ;;  %v141_v11 = vsub.s32 2, %v2681_v9  ;;  %v137_v12 = vsub.s32 1, %v2681_v9  ;;  %v145_v13 = vsub.s32 3, %v2681_v9 }
  0x37   :  { %318 = vmatpush1.bf16.msra.mxu0 %v2131_v15  ;;  %371 = vmatpush1.bf16.msra.mxu1 %v2132_v16  ;;  %v96_v44 = vpack.c.bf16 %v94_v43, %v93_v42  ;;  %v2166_v46 = vld [vmem:[#allocation7 + $0xc8] ss:$16 sps:$4 sm:$0xff]   ;;  %v2171_v47 = vld [vmem:[#allocation7 + $0xa4] ss:$16 sps:$4 sm:$0xff]   ;;  %v2174_v48 = vld [vmem:[#allocation7 + $0xac] ss:$16 sps:$4 sm:$0xff]  }
  0x38   :  { %319 = vmatprep.subr.bf16.mxu0 %v2133_v17  ;;  %372 = vmatprep.subr.bf16.mxu1 %v2135_v18  ;;  %v2169_v49 = vld [vmem:[#allocation7 + $0xa0] ss:$16 sps:$4 sm:$0xff]   ;;  %v2172_v50 = vld [vmem:[#allocation7 + $0xa8] ss:$16 sps:$4 sm:$0xff]   ;;  %v2177_v51 = vld [vmem:[#allocation7 + $0x84] ss:$16 sps:$4 sm:$0xff]  }
  0x39   :  { %v2180_v52 = vld [vmem:[#allocation7 + $0x8c] ss:$16 sps:$4 sm:$0xff]   ;;  %v2175_v53 = vld [vmem:[#allocation7 + $0x80] ss:$16 sps:$4 sm:$0xff]   ;;  %v2178_v54 = vld [vmem:[#allocation7 + $0x88] ss:$16 sps:$4 sm:$0xff]  }
  0x3a   :  { %v2183_v55 = vld [vmem:[#allocation7 + $0x64] ss:$16 sps:$4 sm:$0xff]   ;;  %v2186_v56 = vld [vmem:[#allocation7 + $0x6c] ss:$16 sps:$4 sm:$0xff]   ;;  %v2181_v57 = vld [vmem:[#allocation7 + $0x60] ss:$16 sps:$4 sm:$0xff]  }
  0x3b   :  { %320 = vmatpush1.bf16.msra.mxu0 %v2137_v19  ;;  %373 = vmatpush1.bf16.msra.mxu1 %v2138_v20  ;;  %v2184_v58 = vld [vmem:[#allocation7 + $0x68] ss:$16 sps:$4 sm:$0xff]   ;;  %v2189_v59 = vld [vmem:[#allocation7 + $0x44] ss:$16 sps:$4 sm:$0xff]   ;;  %v2192_v60 = vld [vmem:[#allocation7 + $0x4c] ss:$16 sps:$4 sm:$0xff]  }
  0x3c   :  { %321 = vmatprep.subr.bf16.mxu0 %v2139_v21  ;;  %374 = vmatprep.subr.bf16.mxu1 %v2141_v22  ;;  %v2187_v61 = vld [vmem:[#allocation7 + $0x40] ss:$16 sps:$4 sm:$0xff]   ;;  %v2190_v62 = vld [vmem:[#allocation7 + $0x48] ss:$16 sps:$4 sm:$0xff]   ;;  %v2195_v63 = vld [vmem:[#allocation7 + $0x24] ss:$16 sps:$4 sm:$0xff]  }
  0x3d   :  { %v2198_v1 = vld [vmem:[#allocation7 + $0x2c] ss:$16 sps:$4 sm:$0xff]   ;;  %v2193_v2 = vld [vmem:[#allocation7 + $0x20] ss:$16 sps:$4 sm:$0xff]   ;;  %v2196_v3 = vld [vmem:[#allocation7 + $0x28] ss:$16 sps:$4 sm:$0xff]  }
  0x3e   :  { %v2201_v4 = vld [vmem:[#allocation7 + $0x4] ss:$16 sps:$4 sm:$0xff]   ;;  %v2204_v5 = vld [vmem:[#allocation7 + $0xc] ss:$16 sps:$4 sm:$0xff]   ;;  %v2199_v6 = vld [vmem:[#allocation7] ss:$16 sps:$4 sm:$0xff]  }
  0x3f   :  { %322 = vmatpush1.bf16.msra.mxu0 %v2143_v23  ;;  %375 = vmatpush1.bf16.msra.mxu1 %v2144_v24  ;;  %v2202_v7 = vld [vmem:[#allocation7 + $0x8] ss:$16 sps:$4 sm:$0xff]   ;;  %v129_v14 = vld [vmem:[%s2848_s2] sm:$0xf]  ;;  %vm951_vm0 = vcmask 1041409   ;;  %vm1003_vm1 = vcmask 1043459  }
  0x40   :  { %323 = vmatprep.subr.bf16.mxu0 %v2145_v25  ;;  %376 = vmatprep.subr.bf16.mxu1 %v2147_v26  ;;  %v134_v15 = vrot.slane %v129_v14, %v133_v10  ;;  %v2692_v16 = vrot.slane %v129_v14, %v141_v11  ;;  %v2696_v17 = vrot.slane %v129_v14, %v137_v12  ;;  %vm1005_vm2 = vcmask 1045509  }
  0x41   :  { %v2698_v18 = vrot.slane %v129_v14, %v145_v13  ;;  %vm1007_vm3 = vcmask 1047559  }
  0x43   :  { %324 = vmatpush1.bf16.msra.mxu0 %v2149_v27  ;;  %377 = vmatpush1.bf16.msra.mxu1 %v2150_v28 }
  0x44   :  { %325 = vmatprep.subr.bf16.mxu0 %v2151_v29  ;;  %378 = vmatprep.subr.bf16.mxu1 %v2153_v30 }
  0x47   :  { %326 = vmatpush1.bf16.msra.mxu0 %v2155_v31  ;;  %379 = vmatpush1.bf16.msra.mxu1 %v2156_v32 }
  0x48   :  { %717 = vmatprep.subr.bf16.mxu0 %v2159_v35  ;;  %766 = vmatprep.subr.bf16.mxu1 %v2162_v36 }
  0x4a   :  { %344 = vmatmul.mubr.bf16.vlgmr.msra.gmra.mxu0 %v95_v37  ;;  %397 = vmatmul.mubr.bf16.vlgmr.msra.gmra.mxu1 %v95_v37  ;;  %v2577_v37 = vmov 1983009808  }
  0x4b   :  { %353 = vmatprep.mubr.bf16.mxu0 %v2576_v0  ;;  %406 = vmatprep.mubr.bf16.mxu1 %v2576_v0 }
  0x4c   :  { %718 = vmatpush1.bf16.xpose.msra.mxu0 %v2157_v38  ;;  %767 = vmatpush1.bf16.xpose.msra.mxu1 %v2160_v39  ;;  %v966_v38 = vunpack.c.l.s4 %v2577_v37 }
  0x4d   :  { %719 = vmatprep.subr.bf16.mxu0 %v2165_v40  ;;  %768 = vmatprep.subr.bf16.mxu1 %v2168_v41 }
  0x52   :  { %354 = vmatmul.mubr.bf16.gmra.mxu0 %v96_v44  ;;  %407 = vmatmul.mubr.bf16.gmra.mxu1 %v96_v44 }
  0x54   :  { %720 = vmatpush1.bf16.xpose.msra.mxu0 %v2163_v45  ;;  %769 = vmatpush1.bf16.xpose.msra.mxu1 %v2166_v46 }
  0x55   :  { %721 = vmatprep.subr.bf16.mxu0 %v2171_v47  ;;  %770 = vmatprep.subr.bf16.mxu1 %v2174_v48 }
  0x5c   :  { %722 = vmatpush1.bf16.xpose.msra.mxu0 %v2169_v49  ;;  %771 = vmatpush1.bf16.xpose.msra.mxu1 %v2172_v50 }
  0x5d   :  { %723 = vmatprep.subr.bf16.mxu0 %v2177_v51  ;;  %772 = vmatprep.subr.bf16.mxu1 %v2180_v52 }
  0x64   :  { %724 = vmatpush1.bf16.xpose.msra.mxu0 %v2175_v53  ;;  %773 = vmatpush1.bf16.xpose.msra.mxu1 %v2178_v54 }
  0x65   :  { %725 = vmatprep.subr.bf16.mxu0 %v2183_v55  ;;  %774 = vmatprep.subr.bf16.mxu1 %v2186_v56 }
  0x6c   :  { %726 = vmatpush1.bf16.xpose.msra.mxu0 %v2181_v57  ;;  %775 = vmatpush1.bf16.xpose.msra.mxu1 %v2184_v58 }
  0x6d   :  { %727 = vmatprep.subr.bf16.mxu0 %v2189_v59  ;;  %776 = vmatprep.subr.bf16.mxu1 %v2192_v60 }
  0x74   :  { %728 = vmatpush1.bf16.xpose.msra.mxu0 %v2187_v61  ;;  %777 = vmatpush1.bf16.xpose.msra.mxu1 %v2190_v62 }
  0x75   :  { %729 = vmatprep.subr.bf16.mxu0 %v2195_v63  ;;  %778 = vmatprep.subr.bf16.mxu1 %v2198_v1 }
  0x7c   :  { %730 = vmatpush1.bf16.xpose.msra.mxu0 %v2193_v2  ;;  %779 = vmatpush1.bf16.xpose.msra.mxu1 %v2196_v3 }
  0x7d   :  { %731 = vmatprep.subr.bf16.mxu0 %v2201_v4  ;;  %780 = vmatprep.subr.bf16.mxu1 %v2204_v5 }
  0x84   :  { %732 = vmatpush1.bf16.xpose.msra.mxu0 %v2199_v6  ;;  %781 = vmatpush1.bf16.xpose.msra.mxu1 %v2202_v7 }
 0x10a   :  { %v345_v19 = vpop.f32.mrf.mxu0  ;;  %v398_v20 = vpop.f32.mrf.mxu1 }
 0x10b   :  { %v346_v23 = vadd.f32 %v345_v19, %v134_v15  ;;  %v399_v24 = vadd.f32 %v398_v20, %v2692_v16  ;;  %v967_v20 = vunpack.c.0.s8 %v966_v38 }
 0x10c   :  { %v347_v21 = vpop.f32.mrf.mxu0  ;;  %v400_v22 = vpop.f32.mrf.mxu1 }
 0x10d   :  { %v348_v25 = vadd.f32 %v347_v21, %v2696_v17  ;;  %v401_v26 = vadd.f32 %v400_v22, %v2698_v18 }
 0x10e   :  { %v349_v27 = vpop.f32.mrf.mxu0  ;;  %v402_v28 = vpop.f32.mrf.mxu1 }
 0x10f   :  { %v2063_v29 = vpack.c.bf16 %v348_v25, %v346_v23  ;;  %v2064_v30 = vpack.c.bf16 %v401_v26, %v399_v24  ;;  %v350_v31 = vadd.f32 %v349_v27, %v134_v15  ;;  %v403_v32 = vadd.f32 %v402_v28, %v2692_v16 }
 0x110   :  { %v351_v33 = vpop.f32.mrf.mxu0  ;;  %v404_v34 = vpop.f32.mrf.mxu1 }
 0x111   :  { %465 = vst [vmem:[%s2855_s9] sm:$0xff] %v2063_v29  ;;  %466 = vst [vmem:[%s2855_s9 + $0x8] sm:$0xff] %v2064_v30  ;;  %v884_v35 = vadd.f32 %v350_v31, %v346_v23  ;;  %v898_v36 = vadd.f32 %v403_v32, %v399_v24  ;;  %v2710_v39 = vpack.c.bf16 %v350_v31, %v346_v23 }
 0x112   :  { %v2712_v40 = vpack.c.bf16 %v403_v32, %v399_v24  ;;  %v352_v41 = vadd.f32 %v351_v33, %v2696_v17  ;;  %v405_v42 = vadd.f32 %v404_v34, %v2698_v18  ;;  %v355_v43 = vpop.f32.mrf.mxu0  ;;  %v408_v44 = vpop.f32.mrf.mxu1 }
 0x113   :  { %v885_v45 = vrot.slane %v884_v35, 4  ;;  %v899_v46 = vrot.slane %v898_v36, 4  ;;  %v2716_v47 = vadd.f32 %v355_v43, %v134_v15  ;;  %v2719_v48 = vadd.f32 %v408_v44, %v2692_v16 }
 0x114   :  { %v2065_v49 = vpack.c.bf16 %v352_v41, %v350_v31  ;;  %v891_v50 = vadd.f32 %v352_v41, %v348_v25  ;;  %v2066_v51 = vpack.c.bf16 %v405_v42, %v403_v32  ;;  %v905_v52 = vadd.f32 %v405_v42, %v401_v26  ;;  %v357_v53 = vpop.f32.mrf.mxu0  ;;  %v410_v54 = vpop.f32.mrf.mxu1 }
 0x115   :  { %v886_v55 = vadd.f32 %v885_v45, %v884_v35  ;;  %v900_v56 = vadd.f32 %v899_v46, %v898_v36  ;;  %v358_v57 = vadd.f32 %v357_v53, %v2696_v17  ;;  %v411_v58 = vadd.f32 %v410_v54, %v2698_v18 }
 0x116   :  { %467 = vst [vmem:[%s2855_s9 + $0x10] sm:$0xff] %v2065_v49  ;;  %v892_v59 = vrot.slane %v891_v50, 4  ;;  %468 = vst [vmem:[%s2855_s9 + $0x18] sm:$0xff] %v2066_v51  ;;  %v906_v60 = vrot.slane %v905_v52, 4  ;;  %v2729_v61 = vpack.c.bf16 %v352_v41, %v348_v25  ;;  %v2731_v62 = vpack.c.bf16 %v405_v42, %v401_v26  ;;  %v359_v63 = vpop.f32.mrf.mxu0  ;;  %v412_v1 = vpop.f32.mrf.mxu1 }
 0x117   :  { %v887_v2 = vrot.slane %v886_v55, 2  ;;  %v901_v3 = vrot.slane %v900_v56, 2  ;;  %v2067_v4 = vpack.c.bf16 %v358_v57, %v2716_v47  ;;  %v2068_v5 = vpack.c.bf16 %v411_v58, %v2719_v48 }
 0x118   :  { %v893_v6 = vadd.f32 %v892_v59, %v891_v50  ;;  %v907_v7 = vadd.f32 %v906_v60, %v905_v52  ;;  %749 = vmatprep.mubr.bf16.mxu0 %v2729_v61  ;;  %798 = vmatprep.mubr.bf16.mxu1 %v2731_v62  ;;  %v360_v8 = vadd.f32 %v359_v63, %v134_v15  ;;  %v361_v11 = vpop.f32.mrf.mxu0  ;;  %v414_v13 = vpop.f32.mrf.mxu1 }
 0x119   :  { %v888_v14 = vadd.f32 %v887_v2, %v886_v55  ;;  %v902_v19 = vadd.f32 %v901_v3, %v900_v56  ;;  %469 = vst [vmem:[%s2855_s9 + $0x20] sm:$0xff] %v2067_v4  ;;  %470 = vst [vmem:[%s2855_s9 + $0x28] sm:$0xff] %v2068_v5  ;;  %v413_v21 = vadd.f32 %v412_v1, %v2692_v16  ;;  %750 = vmatmul.mubr.bf16.vlgmr.msra.gmra.mxu0 %v2710_v39 }
 0x11a   :  { %799 = vmatmul.mubr.bf16.vlgmr.msra.gmra.mxu1 %v2712_v40  ;;  %v894_v15 = vrot.slane %v893_v6, 2  ;;  %v908_v22 = vrot.slane %v907_v7, 2  ;;  %v912_v23 = vadd.f32 %v360_v8, %v2716_v47  ;;  %v362_v24 = vadd.f32 %v361_v11, %v2696_v17 }
 0x11b   :  { %v889_v25 = vrot.slane %v888_v14, 1  ;;  %v926_v26 = vadd.f32 %v413_v21, %v2719_v48  ;;  %v415_v27 = vadd.f32 %v414_v13, %v2698_v18  ;;  %v903_v16 = vrot.slane %v902_v19, 1 }
 0x11c   :  { %v895_v28 = vadd.f32 %v894_v15, %v893_v6  ;;  %v909_v29 = vadd.f32 %v908_v22, %v907_v7  ;;  %v913_v30 = vrot.slane %v912_v23, 4  ;;  %v2069_v31 = vpack.c.bf16 %v362_v24, %v360_v8 }
 0x11d   :  { %v2751_v32 = vsub.s32 %v967_v20, %v2681_v9  ;;  %v927_v33 = vrot.slane %v926_v26, 4  ;;  %v919_v34 = vadd.f32 %v362_v24, %v358_v57  ;;  %v2070_v17 = vpack.c.bf16 %v415_v27, %v413_v21 }
 0x11e   :  { %v896_v35 = vrot.slane %v895_v28, 1  ;;  %v910_v36 = vrot.slane %v909_v29, 1  ;;  %v914_v37 = vadd.f32 %v913_v30, %v912_v23  ;;  %471 = vst [vmem:[%s2855_s9 + $0x30] sm:$0xff] %v2069_v31  ;;  %v890_v38 = vadd.f32 %v889_v25, %v888_v14 }
 0x11f   :  { %v928_v18 = vadd.f32 %v927_v33, %v926_v26  ;;  %v920_v41 = vrot.slane %v919_v34, 4  ;;  %472 = vst [vmem:[%s2855_s9 + $0x38] sm:$0xff] %v2070_v17  ;;  %v933_v45 = vadd.f32 %v415_v27, %v411_v58  ;;  %v422_v50 = vpack.c.bf16 %v362_v24, %v358_v57  ;;  %s2579_s9 = smov [#allocation2]  }
 0x120   :  { %v897_v42 = vadd.f32 %v896_v35, %v895_v28  ;;  %v911_v43 = vadd.f32 %v910_v36, %v909_v29  ;;  %v915_v44 = vrot.slane %v914_v37, 2  ;;  %v424_v51 = vpack.c.bf16 %v415_v27, %v411_v58  ;;  %s87_s28 = sshll.u32 %s2579_s9, 4  ;;  %s88_s28 = int_to_ptr.vmem [resolvable:$true] %s87_s28 }
 0x121   :  { %v929_v46 = vrot.slane %v928_v18, 2  ;;  %v921_v49 = vadd.f32 %v920_v41, %v919_v34  ;;  %v904_v52 = vadd.f32 %v903_v16, %v902_v19  ;;  %v934_v54 = vrot.slane %v933_v45, 4  ;;  %757 = vmatprep.mubr.bf16.mxu0 %v422_v50  ;;  %s2425_s29 = scalar_lea.vmem %s88_s28, 10240  ;;  %p2430_p2 = scmp.lt.s32.totalorder %s88_s28, %s88_s28 }
 0x122   :  { %v916_v53 = vadd.f32 %v915_v44, %v914_v37  ;;  %806 = vmatprep.mubr.bf16.mxu1 %v424_v51  ;;  %v421_v59 = vpack.c.bf16 %v360_v8, %v2716_v47  ;;  %v423_v60 = vpack.c.bf16 %v413_v21, %v2719_v48  ;;  %v2761_v63 = vmul.f32 0.0625, %v897_v42  ;;  %p2426_p1 = scmp.ne.s32.totalorder %s88_s28, %s2425_s29  ;;  %p2431_p3 = scmp.lt.s32.totalorder %s2425_s29, %s2425_s29 }
 0x123   :  { %v930_v55 = vadd.f32 %v929_v46, %v928_v18  ;;  %v922_v56 = vrot.slane %v921_v49, 2  ;;  %v2763_v1 = vmul.f32 0.0625, %v911_v43  ;;  %v935_v3 = vadd.f32 %v934_v54, %v933_v45 }
 0x124   :  { %v917_v2 = vrot.slane %v916_v53, 1  ;;  %v2765_v4 = vmul.f32 0.0625, %v890_v38  ;;  %758 = vmatmul.mubr.bf16.gmra.mxu0 %v421_v59  ;;  %807 = vmatmul.mubr.bf16.gmra.mxu1 %v423_v60  ;;  %v2767_v5 = vmul.f32 0.0625, %v904_v52  ;;  %2549 = vmul.bf16.f32.vacc1 %v2710_v39, %v2710_v39  ;;  %p2432_p4 = por %p2431_p3, %p2430_p2 }
 0x125   :  { %v931_v57 = vrot.slane %v930_v55, 1  ;;  %v923_v58 = vadd.f32 %v922_v56, %v921_v49  ;;  %v936_v7 = vrot.slane %v935_v3, 2  ;;  %2550 = vmac.bf16.f32.vacc1 %v2729_v61, %v2729_v61 }
 0x126   :  { %v918_v6 = vadd.f32 %v917_v2, %v916_v53  ;;  %v963_v48 = vcombine.low %v2765_v4, %v2761_v63  ;;  %v964_v8 = vcombine.low %v2767_v5, %v2763_v1  ;;  %2551 = vmac.bf16.f32.vacc1 %v2712_v40, %v2712_v40  ;;  %p2433_p5 = pnand %p2432_p4, %p2426_p1 }
 0x127   :  { %v932_v11 = vadd.f32 %v931_v57, %v930_v55  ;;  %v924_v47 = vrot.slane %v923_v58, 1  ;;  %v937_v14 = vadd.f32 %v936_v7, %v935_v3  ;;  %2552 = vmac.bf16.f32.vacc1 %v2731_v62, %v2731_v62 }
 0x128   :  { %v2773_v13 = vmul.f32 0.0625, %v918_v6  ;;  %v2578_v27 = vmov 1935823168   ;;  %v971_v40 = vrot.slane %v963_v48, %v2751_v32  ;;  %2529 = vmul.bf16.f32.vacc0 %v421_v59, %v421_v59 }
 0x129   :  { %v2775_v19 = vmul.f32 0.0625, %v932_v11  ;;  %v925_v20 = vadd.f32 %v924_v47, %v923_v58  ;;  %v938_v21 = vrot.slane %v937_v14, 1  ;;  %v2553_v24 = vmovacc.add.low.vacc1 }
 0x12a   :  { %v2554_v25 = vmovacc.add.high.vacc1  ;;  %v2557_v28 = vunpack.c.l.s4 %v2578_v27  ;;  %2530 = vmac.bf16.f32.vacc0 %v422_v50, %v422_v50  ;;  %v978_v34 = vrot.slane %v964_v8, %v2751_v32 }
 0x12b   :  { %v2781_v15 = vmul.f32 0.0625, %v925_v20  ;;  %v939_v22 = vadd.f32 %v938_v21, %v937_v14  ;;  %2531 = vmac.bf16.f32.vacc0 %v423_v60, %v423_v60 }
 0x12c   :  { %v2555_v26 = vcombine.low %v2553_v24, %v2554_v25  ;;  %v2556_v39 = vcombine.high %v2553_v24, %v2554_v25  ;;  %v2558_v61 = vunpack.c.0.s8 %v2557_v28  ;;  %2532 = vmac.bf16.f32.vacc0 %v424_v51, %v424_v51 }
 0x12d   :  { %v980_v23 = vcombine.low %v2773_v13, %v2781_v15  ;;  %v2790_v16 = vmul.f32 0.0625, %v939_v22  ;;  %v979_v43 = vcombine.low %v971_v40, %v978_v34 }
 0x12e   :  { %v2561_v29 = vsub.s32 %v2558_v61, %v2681_v9  ;;  %v2533_v37 = vmovacc.add.low.vacc0 }
 0x12f   :  { %v988_v33 = vrot.slane %v980_v23, %v2751_v32  ;;  %v981_v62 = vcombine.low %v2775_v19, %v2790_v16  ;;  %v2534_v17 = vmovacc.add.high.vacc0 }
 0x130   :  { %v2562_v30 = vrot.slane %v2555_v26, %v2561_v29  ;;  %v2568_v31 = vrot.slane %v2556_v39, %v2561_v29 }
 0x131   :  { %v995_v35 = vrot.slane %v981_v62, %v2751_v32  ;;  %v2535_v38 = vcombine.low %v2533_v37, %v2534_v17  ;;  %v2536_v18 = vcombine.high %v2533_v37, %v2534_v17 }
 0x132   :  { %508 = vadd.xlane.f32.xlu0 %v2562_v30 }
 0x133   :  { %v996_v36 = vcombine.low %v988_v33, %v995_v35  ;;  %v2542_v41 = vrot.slane %v2535_v38, %v2561_v29  ;;  %v2548_v42 = vrot.slane %v2536_v18, %v2561_v29 }
 0x135   :  { %v1001_v44 = vrot.slane %v996_v36, 7  ;;  %518 = vadd.xlane.f32.xlu1 %v2542_v41 }
 0x136   :  { %513 = vadd.xlane.f32.xlu0 %v2568_v31 }
 0x137   :  { %v1002_v45 = vsel %vm951_vm0, %v1001_v44, %v979_v43 }
 0x138   :  { %v1004_v32 = vsel %vm1003_vm1, %v1001_v44, %v1002_v45 }
 0x139   :  { %v1006_v46 = vsel %vm1005_vm2, %v1001_v44, %v1004_v32  ;;  %523 = vadd.xlane.f32.xlu1 %v2548_v42 }
 0x13a   :  { %v1008_v49 = vsel %vm1007_vm3, %v1001_v44, %v1006_v46 }
 0x13b   :  { %1010 = vst [vmem:[#allocation13] sm:$0xff] %v1008_v49 }
 0x13c   :  { %2436 = shalt.err (!%p2433_p5)  }
 0x13d   :  { %90 = dma.hbm_to_vmem [thread:$0]  %s2851_s5, 10240, %s88_s28, [#allocation3]  ;;  %v1964_v59 = vld [vmem:[%s2850_s4] ss:$0 sm:$0xff] }
 0x1bb   :  { %v509_v52 = vpop.xlane.xlu0 %508 }
 0x1be   :  { %v519_v24 = vpop.xlane.xlu1 %518 }
 0x1bf   :  { %v514_v47 = vpop.xlane.xlu0 %513 }
 0x1c2   :  { %v524_v37 = vpop.xlane.xlu1 %523 }
 0x1d9   :  { %v751_v50 = vpop.f32.mrf.mxu0 }
 0x1da   :  { %v800_v51 = vpop.f32.mrf.mxu1 }
 0x1db   :  { %v801_v53 = vadd.f32 %v800_v51, %v751_v50  ;;  %v753_v54 = vpop.f32.mrf.mxu0 }
 0x1dc   :  { %v802_v55 = vpop.f32.mrf.mxu1 }
 0x1dd   :  { %v815_v56 = vmul.f32 2.0, %v801_v53  ;;  %v754_v60 = vpop.f32.mrf.mxu0 }
 0x1de   :  { %v803_v2 = vpop.f32.mrf.mxu1 }
 0x1df   :  { %v819_v3 = vsub.f32 %v509_v52, %v815_v56  ;;  %v804_v57 = vadd.f32 %v803_v2, %v754_v60  ;;  %v756_v58 = vpop.f32.mrf.mxu0 }
 0x1e0   :  { %v805_v6 = vpop.f32.mrf.mxu1 }
 0x1e1   :  { %v830_v7 = vadd.f32 %v1964_v59, %v819_v3  ;;  %v816_v11 = vmul.f32 2.0, %v804_v57 }
 0x1e3   :  { %v834_v48 = vmax.f32 %v830_v7, 0.0  ;;  %v820_v8 = vsub.f32 %v514_v47, %v816_v11 }
 0x1e4   :  { %v759_v22 = vpop.f32.mrf.mxu0  ;;  %v808_v23 = vpop.f32.mrf.mxu1 }
 0x1e5   :  { %v838_v14 = vadd.f32 1.0, %v834_v48  ;;  %v850_v20 = vadd.f32 0.0001, %v834_v48  ;;  %v831_v21 = vadd.f32 %v1964_v59, %v820_v8  ;;  %v809_v26 = vadd.f32 %v808_v23, %v759_v22 }
 0x1e6   :  { %v761_v39 = vpop.f32.mrf.mxu0  ;;  %v810_v27 = vpop.f32.mrf.mxu1 }
 0x1e7   :  { %2205 = vlog2.f32 %v838_v14  ;;  %v835_v25 = vmax.f32 %v831_v21, 0.0  ;;  %v817_v29 = vmul.f32 2.0, %v809_v26 }
 0x1e8   :  { %2207 = vlog2.f32 %v850_v20  ;;  %v762_v30 = vpop.f32.mrf.mxu0  ;;  %v811_v31 = vpop.f32.mrf.mxu1 }
 0x1e9   :  { %v839_v28 = vadd.f32 1.0, %v835_v25  ;;  %v851_v61 = vadd.f32 0.0001, %v835_v25  ;;  %v821_v40 = vsub.f32 %v519_v24, %v817_v29  ;;  %v812_v33 = vadd.f32 %v811_v31, %v762_v30 }
 0x1ea   :  { %v764_v62 = vpop.f32.mrf.mxu0  ;;  %v813_v34 = vpop.f32.mrf.mxu1 }
 0x1eb   :  { %2209 = vlog2.f32 %v839_v28  ;;  %v832_v35 = vadd.f32 %v1964_v59, %v821_v40  ;;  %v818_v36 = vmul.f32 2.0, %v812_v33 }
 0x1ec   :  { %2211 = vlog2.f32 %v851_v61 }
 0x1ed   :  { %v836_v17 = vmax.f32 %v832_v35, 0.0  ;;  %v822_v38 = vsub.f32 %v524_v37, %v818_v36 }
 0x1ef   :  { %v840_v18 = vadd.f32 1.0, %v836_v17  ;;  %v852_v41 = vadd.f32 0.0001, %v836_v17  ;;  %v833_v42 = vadd.f32 %v1964_v59, %v822_v38 }
 0x1f1   :  { %2213 = vlog2.f32 %v840_v18  ;;  %v837_v43 = vmax.f32 %v833_v42, 0.0 }
 0x1f2   :  { %2215 = vlog2.f32 %v852_v41 }
 0x1f3   :  { %v841_v46 = vadd.f32 1.0, %v837_v43  ;;  %v853_v49 = vadd.f32 0.0001, %v837_v43 }
 0x1f4   :  { %v2206_v44 = vpop.eup %2205 }
 0x1f5   :  { %v2208_v45 = vpop.eup %2207  ;;  %v843_v32 = vmul.f32 0.6931472, %v2206_v44  ;;  %2217 = vlog2.f32 %v841_v46 }
 0x1f6   :  { %v855_v50 = vmul.f32 0.6931472, %v2208_v45  ;;  %2219 = vlog2.f32 %v853_v49 }
 0x1f8   :  { %v2210_v51 = vpop.eup %2209  ;;  %v862_v52 = vsub.f32 %v843_v32, %v855_v50 }
 0x1f9   :  { %v2212_v53 = vpop.eup %2211  ;;  %v845_v54 = vmul.f32 0.6931472, %v2210_v51 }
 0x1fa   :  { %866 = vst [vmem:[#allocation10] sm:$0xff] %v862_v52  ;;  %v857_v55 = vmul.f32 0.6931472, %v2212_v53 }
 0x1fc   :  { %v863_v56 = vsub.f32 %v845_v54, %v857_v55 }
 0x1fe   :  { %867 = vst [vmem:[#allocation10 + $0x8] sm:$0xff] %v863_v56  ;;  %v870_v59 = vmax.f32 %v862_v52, %v863_v56  ;;  %v2214_v60 = vpop.eup %2213 }
 0x1ff   :  { %v2216_v2 = vpop.eup %2215  ;;  %v847_v3 = vmul.f32 0.6931472, %v2214_v60 }
 0x200   :  { %v871_v57 = vrot.slane %v870_v59, 4  ;;  %v859_v58 = vmul.f32 0.6931472, %v2216_v2 }
 0x202   :  { %v2218_v6 = vpop.eup %2217  ;;  %v864_v7 = vsub.f32 %v847_v3, %v859_v58  ;;  %v872_v48 = vmax.f32 %v870_v59, %v871_v57 }
 0x203   :  { %v2220_v11 = vpop.eup %2219  ;;  %v849_v47 = vmul.f32 0.6931472, %v2218_v6 }
 0x204   :  { %868 = vst [vmem:[#allocation10 + $0x10] sm:$0xff] %v864_v7  ;;  %v861_v8 = vmul.f32 0.6931472, %v2220_v11  ;;  %v873_v20 = vrot.slane %v872_v48, 2 }
 0x206   :  { %v865_v14 = vsub.f32 %v849_v47, %v861_v8  ;;  %v874_v23 = vmax.f32 %v872_v48, %v873_v20 }
 0x208   :  { %869 = vst [vmem:[#allocation10 + $0x18] sm:$0xff] %v865_v14  ;;  %v877_v21 = vmax.f32 %v864_v7, %v865_v14  ;;  %v875_v26 = vrot.slane %v874_v23, 1 }
 0x20a   :  { %v878_v22 = vrot.slane %v877_v21, 4  ;;  %v876_v28 = vmax.f32 %v874_v23, %v875_v26 }
 0x20c   :  { %v879_v24 = vmax.f32 %v877_v21, %v878_v22 }
 0x20e   :  { %v880_v25 = vrot.slane %v879_v24, 2 }
 0x210   :  { %v881_v39 = vmax.f32 %v879_v24, %v880_v25 }
 0x212   :  { %v882_v27 = vrot.slane %v881_v39, 1 }
 0x214   :  { %v883_v61 = vmax.f32 %v881_v39, %v882_v27 }
 0x216   :  { %v2806_v29 = vsel %vm951_vm0, %v883_v61, %v876_v28 }
 0x217   :  { %954 = vst [vmem:[#allocation11] sm:$0x3] %v2806_v29 }
 0x218   :  { %2521 = dma.done.wait [#allocation3], 10240 }
 0x219   :  { %2522 = vsyncadd [#allocation3], 4294957056  ;;  %v1016_v30 = vsel %vm951_vm0, %v2781_v15, %v2761_v63  ;;  %v1018_v31 = vsel %vm951_vm0, %v2790_v16, %v2763_v1  ;;  %v2221_v62 = vld [vmem:[#allocation2 + $0x74] ss:$8 sps:$4 sm:$0xff]   ;;  %v2223_v34 = vld [vmem:[#allocation2 + $0x70] ss:$8 sps:$4 sm:$0xff]  }
 0x21a   :  { %v1024_v40 = vpack.c.bf16 %v1016_v30, %v1016_v30  ;;  %v1026_v33 = vpack.c.bf16 %v1018_v31, %v1018_v31  ;;  %1520 = vmatprep.subr.bf16.mxu0 %v2221_v62  ;;  %v2224_v35 = vld [vmem:[#allocation2 + $0x174] ss:$8 sps:$4 sm:$0xff]   ;;  %v2226_v36 = vld [vmem:[#allocation2 + $0x170] ss:$8 sps:$4 sm:$0xff]   ;;  %v2227_v37 = vld [vmem:[#allocation2 + $0x64] ss:$8 sps:$4 sm:$0xff]  }
 0x21b   :  { %1521 = vmatpush1.bf16.msra.mxu0 %v2223_v34  ;;  %v2229_v17 = vld [vmem:[#allocation2 + $0x60] ss:$8 sps:$4 sm:$0xff]   ;;  %1561 = vmatprep.subr.bf16.mxu1 %v2224_v35  ;;  %v2230_v38 = vld [vmem:[#allocation2 + $0x164] ss:$8 sps:$4 sm:$0xff]   ;;  %v2233_v15 = vld [vmem:[#allocation2 + $0x54] ss:$8 sps:$4 sm:$0xff]  }
 0x21c   :  { %1552 = vmatprep.mubr.bf16.mxu0 %v1024_v40  ;;  %1593 = vmatprep.mubr.bf16.mxu1 %v1026_v33  ;;  %v2232_v63 = vld [vmem:[#allocation2 + $0x160] ss:$8 sps:$4 sm:$0xff]   ;;  %v2235_v1 = vld [vmem:[#allocation2 + $0x50] ss:$8 sps:$4 sm:$0xff]   ;;  %v2236_v16 = vld [vmem:[#allocation2 + $0x154] ss:$8 sps:$4 sm:$0xff]  }
 0x21d   :  { %1562 = vmatpush1.bf16.msra.mxu1 %v2226_v36  ;;  %1522 = vmatprep.subr.bf16.mxu0 %v2227_v37  ;;  %v2239_v18 = vld [vmem:[#allocation2 + $0x44] ss:$8 sps:$4 sm:$0xff]   ;;  %v2238_v41 = vld [vmem:[#allocation2 + $0x150] ss:$8 sps:$4 sm:$0xff]   ;;  %v2241_v43 = vld [vmem:[#allocation2 + $0x40] ss:$8 sps:$4 sm:$0xff]  }
 0x21e   :  { %1563 = vmatprep.subr.bf16.mxu1 %v2230_v38  ;;  %v2242_v42 = vld [vmem:[#allocation2 + $0x144] ss:$8 sps:$4 sm:$0xff]   ;;  %v2245_v44 = vld [vmem:[#allocation2 + $0x34] ss:$8 sps:$4 sm:$0xff]   ;;  %v2244_v45 = vld [vmem:[#allocation2 + $0x140] ss:$8 sps:$4 sm:$0xff]  }
 0x21f   :  { %1523 = vmatpush1.bf16.msra.mxu0 %v2229_v17  ;;  %v2248_v32 = vld [vmem:[#allocation2 + $0x134] ss:$8 sps:$4 sm:$0xff]   ;;  %v2247_v46 = vld [vmem:[#allocation2 + $0x30] ss:$8 sps:$4 sm:$0xff]   ;;  %v2251_v49 = vld [vmem:[#allocation2 + $0x24] ss:$8 sps:$4 sm:$0xff]  }
 0x220   :  { %1524 = vmatprep.subr.bf16.mxu0 %v2233_v15  ;;  %v2250_v50 = vld [vmem:[#allocation2 + $0x130] ss:$8 sps:$4 sm:$0xff]   ;;  %v2254_v51 = vld [vmem:[#allocation2 + $0x124] ss:$8 sps:$4 sm:$0xff]   ;;  %v2253_v52 = vld [vmem:[#allocation2 + $0x20] ss:$8 sps:$4 sm:$0xff]  }
 0x221   :  { %1564 = vmatpush1.bf16.msra.mxu1 %v2232_v63  ;;  %v2257_v53 = vld [vmem:[#allocation2 + $0x14] ss:$8 sps:$4 sm:$0xff]   ;;  %v2256_v54 = vld [vmem:[#allocation2 + $0x120] ss:$8 sps:$4 sm:$0xff]   ;;  %v2259_v56 = vld [vmem:[#allocation2 + $0x10] ss:$8 sps:$4 sm:$0xff]  }
 0x222   :  { %1565 = vmatprep.subr.bf16.mxu1 %v2236_v16  ;;  %v2260_v55 = vld [vmem:[#allocation2 + $0x114] ss:$8 sps:$4 sm:$0xff]   ;;  %v2263_v59 = vld [vmem:[#allocation2 + $0x4] ss:$8 sps:$4 sm:$0xff]   ;;  %v2262_v60 = vld [vmem:[#allocation2 + $0x110] ss:$8 sps:$4 sm:$0xff]   ;;  %v1015_v16 = vsel %vm951_vm0, %v2773_v13, %v2765_v4 }
 0x223   :  { %1525 = vmatpush1.bf16.msra.mxu0 %v2235_v1  ;;  %v2266_v2 = vld [vmem:[#allocation2 + $0x104] ss:$8 sps:$4 sm:$0xff]   ;;  %v2265_v3 = vld [vmem:[#allocation2] ss:$8 sps:$4 sm:$0xff]   ;;  %v2269_v57 = vld [vmem:[#allocation2 + $0xf4] ss:$8 sps:$4 sm:$0xff]  }
 0x224   :  { %1526 = vmatprep.subr.bf16.mxu0 %v2239_v18  ;;  %v2268_v58 = vld [vmem:[#allocation2 + $0x100] ss:$8 sps:$4 sm:$0xff]   ;;  %v2272_v6 = vld [vmem:[#allocation2 + $0x1f4] ss:$8 sps:$4 sm:$0xff]   ;;  %v2271_v7 = vld [vmem:[#allocation2 + $0xf0] ss:$8 sps:$4 sm:$0xff]  }
 0x225   :  { %1566 = vmatpush1.bf16.msra.mxu1 %v2238_v41  ;;  %v2275_v11 = vld [vmem:[#allocation2 + $0xe4] ss:$8 sps:$4 sm:$0xff]   ;;  %v2274_v47 = vld [vmem:[#allocation2 + $0x1f0] ss:$8 sps:$4 sm:$0xff]   ;;  %v2277_v8 = vld [vmem:[#allocation2 + $0xe0] ss:$8 sps:$4 sm:$0xff]   ;;  %v1017_v41 = vsel %vm951_vm0, %v2775_v19, %v2767_v5 }
 0x226   :  { %1567 = vmatprep.subr.bf16.mxu1 %v2242_v42  ;;  %v2278_v48 = vld [vmem:[#allocation2 + $0x1e4] ss:$8 sps:$4 sm:$0xff]   ;;  %v2281_v14 = vld [vmem:[#allocation2 + $0xd4] ss:$8 sps:$4 sm:$0xff]   ;;  %v2280_v20 = vld [vmem:[#allocation2 + $0x1e0] ss:$8 sps:$4 sm:$0xff]   ;;  %v1023_v42 = vpack.c.bf16 %v1015_v16, %v1015_v16 }
 0x227   :  { %1527 = vmatpush1.bf16.msra.mxu0 %v2241_v43  ;;  %v2284_v21 = vld [vmem:[#allocation2 + $0x1d4] ss:$8 sps:$4 sm:$0xff]   ;;  %v2283_v22 = vld [vmem:[#allocation2 + $0xd0] ss:$8 sps:$4 sm:$0xff]   ;;  %v2287_v23 = vld [vmem:[#allocation2 + $0xc4] ss:$8 sps:$4 sm:$0xff]   ;;  %v1025_v43 = vpack.c.bf16 %v1017_v41, %v1017_v41 }
 0x228   :  { %1528 = vmatprep.subr.bf16.mxu0 %v2245_v44  ;;  %v2286_v24 = vld [vmem:[#allocation2 + $0x1d0] ss:$8 sps:$4 sm:$0xff]   ;;  %v2290_v25 = vld [vmem:[#allocation2 + $0x1c4] ss:$8 sps:$4 sm:$0xff]   ;;  %v2289_v26 = vld [vmem:[#allocation2 + $0xc0] ss:$8 sps:$4 sm:$0xff]  }
 0x229   :  { %1568 = vmatpush1.bf16.msra.mxu1 %v2244_v45  ;;  %v2293_v39 = vld [vmem:[#allocation2 + $0xb4] ss:$8 sps:$4 sm:$0xff]   ;;  %v2292_v27 = vld [vmem:[#allocation2 + $0x1c0] ss:$8 sps:$4 sm:$0xff]   ;;  %v2295_v61 = vld [vmem:[#allocation2 + $0xb0] ss:$8 sps:$4 sm:$0xff]  }
 0x22a   :  { %1569 = vmatprep.subr.bf16.mxu1 %v2248_v32  ;;  %v2296_v28 = vld [vmem:[#allocation2 + $0x1b4] ss:$8 sps:$4 sm:$0xff]   ;;  %v2299_v30 = vld [vmem:[#allocation2 + $0xa4] ss:$8 sps:$4 sm:$0xff]   ;;  %v2298_v31 = vld [vmem:[#allocation2 + $0x1b0] ss:$8 sps:$4 sm:$0xff]  }
 0x22b   :  { %1529 = vmatpush1.bf16.msra.mxu0 %v2247_v46  ;;  %v2302_v40 = vld [vmem:[#allocation2 + $0x1a4] ss:$8 sps:$4 sm:$0xff]   ;;  %v2301_v33 = vld [vmem:[#allocation2 + $0xa0] ss:$8 sps:$4 sm:$0xff]   ;;  %v2305_v34 = vld [vmem:[#allocation2 + $0x94] ss:$8 sps:$4 sm:$0xff]  }
 0x22c   :  { %1530 = vmatprep.subr.bf16.mxu0 %v2251_v49  ;;  %v2304_v62 = vld [vmem:[#allocation2 + $0x1a0] ss:$8 sps:$4 sm:$0xff]   ;;  %v2307_v35 = vld [vmem:[#allocation2 + $0x90] ss:$8 sps:$4 sm:$0xff]   ;;  %v2308_v36 = vld [vmem:[#allocation2 + $0x194] ss:$8 sps:$4 sm:$0xff]  }
 0x22d   :  { %1570 = vmatpush1.bf16.msra.mxu1 %v2250_v50  ;;  %v2311_v37 = vld [vmem:[#allocation2 + $0x84] ss:$8 sps:$4 sm:$0xff]   ;;  %v2310_v17 = vld [vmem:[#allocation2 + $0x190] ss:$8 sps:$4 sm:$0xff]   ;;  %v2313_v63 = vld [vmem:[#allocation2 + $0x80] ss:$8 sps:$4 sm:$0xff]  }
 0x22e   :  { %1571 = vmatprep.subr.bf16.mxu1 %v2254_v51  ;;  %v2314_v38 = vld [vmem:[#allocation2 + $0x184] ss:$8 sps:$4 sm:$0xff]   ;;  %v2319_v15 = vld [vmem:[#allocation2 + $0x274] ss:$8 sps:$4 sm:$0xff]   ;;  %v2316_v1 = vld [vmem:[#allocation2 + $0x180] ss:$8 sps:$4 sm:$0xff]  }
 0x22f   :  { %1531 = vmatpush1.bf16.msra.mxu0 %v2253_v52  ;;  %v2317_v18 = vld [vmem:[#allocation2 + $0x270] ss:$8 sps:$4 sm:$0xff]   ;;  %v2322_v44 = vld [vmem:[#allocation2 + $0x264] ss:$8 sps:$4 sm:$0xff]   ;;  %v2320_v45 = vld [vmem:[#allocation2 + $0x260] ss:$8 sps:$4 sm:$0xff]  }
 0x230   :  { %1532 = vmatprep.subr.bf16.mxu0 %v2257_v53  ;;  %v2325_v4 = vld [vmem:[#allocation2 + $0x254] ss:$8 sps:$4 sm:$0xff]   ;;  %v2323_v13 = vld [vmem:[#allocation2 + $0x250] ss:$8 sps:$4 sm:$0xff]   ;;  %v2328_v32 = vld [vmem:[#allocation2 + $0x244] ss:$8 sps:$4 sm:$0xff]  }
 0x231   :  { %1572 = vmatpush1.bf16.msra.mxu1 %v2256_v54  ;;  %v2326_v5 = vld [vmem:[#allocation2 + $0x240] ss:$8 sps:$4 sm:$0xff]   ;;  %v2331_v19 = vld [vmem:[#allocation2 + $0x234] ss:$8 sps:$4 sm:$0xff]   ;;  %v2329_v46 = vld [vmem:[#allocation2 + $0x230] ss:$8 sps:$4 sm:$0xff]   ;;  %v1027_v54 = vpack.c.bf16 %v2806_v29, %v2806_v29 }
 0x232   :  { %1573 = vmatprep.subr.bf16.mxu1 %v2260_v55  ;;  %v2334_v49 = vld [vmem:[#allocation2 + $0x224] ss:$8 sps:$4 sm:$0xff]   ;;  %v2332_v50 = vld [vmem:[#allocation2 + $0x220] ss:$8 sps:$4 sm:$0xff]   ;;  %v2337_v51 = vld [vmem:[#allocation2 + $0x214] ss:$8 sps:$4 sm:$0xff]  }
 0x233   :  { %1533 = vmatpush1.bf16.msra.mxu0 %v2259_v56  ;;  %v2340_v52 = vld [vmem:[#allocation2 + $0x204] ss:$8 sps:$4 sm:$0xff]   ;;  %v2338_v53 = vld [vmem:[#allocation2 + $0x200] ss:$8 sps:$4 sm:$0xff]   ;;  %v2341_v55 = vld [vmem:[#allocation9 + $0x78] sm:$0xff]   ;;  %s2581_s16 = smov [#allocation10]  }
 0x234   :  { %1534 = vmatprep.subr.bf16.mxu0 %v2263_v59  ;;  %v2342_v56 = vld [vmem:[#allocation9 + $0x38] sm:$0xff]   ;;  %v2343_v59 = vld [vmem:[#allocation9 + $0x70] sm:$0xff]   ;;  %s1830_s17 = sshll.u32 %s2581_s16, 4  ;;  %s1831_s17 = int_to_ptr.vmem [resolvable:$true] %s1830_s17 }
 0x235   :  { %1574 = vmatpush1.bf16.msra.mxu1 %v2262_v60  ;;  %v2344_v60 = vld [vmem:[#allocation9 + $0x30] sm:$0xff]   ;;  %v2350_v29 = vld [vmem:[#allocation9 + $0x18] sm:$0xff]  }
 0x236   :  { %1575 = vmatprep.subr.bf16.mxu1 %v2266_v2  ;;  %v2345_v2 = vld [vmem:[#allocation9 + $0x68] sm:$0xff]  }
 0x237   :  { %1535 = vmatpush1.bf16.msra.mxu0 %v2265_v3  ;;  %v2346_v3 = vld [vmem:[#allocation9 + $0x28] sm:$0xff]  }
 0x238   :  { %1536 = vmatprep.subr.bf16.mxu0 %v2269_v57  ;;  %v2347_v57 = vld [vmem:[#allocation9 + $0x60] sm:$0xff]  }
 0x239   :  { %1576 = vmatpush1.bf16.msra.mxu1 %v2268_v58  ;;  %v2348_v58 = vld [vmem:[#allocation9 + $0x20] sm:$0xff]  }
 0x23a   :  { %1577 = vmatprep.subr.bf16.mxu1 %v2272_v6  ;;  %v2349_v6 = vld [vmem:[#allocation9 + $0x58] sm:$0xff]  }
 0x23b   :  { %1537 = vmatpush2.bf16.msra.mxu0 %v2271_v7  ;;  %v2351_v7 = vld [vmem:[#allocation9 + $0x50] sm:$0xff]  }
 0x23c   :  { %1538 = vmatprep.subr.bf16.mxu0 %v2275_v11  ;;  %v2352_v11 = vld [vmem:[#allocation9 + $0x10] sm:$0xff]  }
 0x23d   :  { %1578 = vmatpush2.bf16.msra.mxu1 %v2274_v47  ;;  %v2353_v47 = vld [vmem:[#allocation9 + $0x48] sm:$0xff]  }
 0x23e   :  { %1579 = vmatprep.subr.bf16.mxu1 %v2278_v48  ;;  %v2354_v48 = vld [vmem:[#allocation9 + $0x8] sm:$0xff]  }
 0x23f   :  { %1539 = vmatpush2.bf16.msra.mxu0 %v2277_v8  ;;  %v2355_v8 = vld [vmem:[#allocation9 + $0x40] sm:$0xff]  }
 0x240   :  { %1540 = vmatprep.subr.bf16.mxu0 %v2281_v14  ;;  %v2356_v14 = vld [vmem:[#allocation9] sm:$0xff]  }
 0x241   :  { %1580 = vmatpush2.bf16.msra.mxu1 %v2280_v20 }
 0x242   :  { %1581 = vmatprep.subr.bf16.mxu1 %v2284_v21 }
 0x243   :  { %1541 = vmatpush2.bf16.msra.mxu0 %v2283_v22 }
 0x244   :  { %1542 = vmatprep.subr.bf16.mxu0 %v2287_v23 }
 0x245   :  { %1582 = vmatpush2.bf16.msra.mxu1 %v2286_v24 }
 0x246   :  { %1583 = vmatprep.subr.bf16.mxu1 %v2290_v25 }
 0x247   :  { %1543 = vmatpush2.bf16.msra.mxu0 %v2289_v26 }
 0x248   :  { %1544 = vmatprep.subr.bf16.mxu0 %v2293_v39 }
 0x249   :  { %1584 = vmatpush2.bf16.msra.mxu1 %v2292_v27  ;;  %v1108_v27 = vld [vmem:[%s2852_s6] sm:$0x3]  ;;  %s2580_s6 = smov [#allocation11]  }
 0x24a   :  { %1585 = vmatprep.subr.bf16.mxu1 %v2296_v28  ;;  %v1113_v28 = vrot.slane %v1108_v27, %v133_v10  ;;  %s1843_s2 = sshll.u32 %s2580_s6, 4  ;;  %s1844_s2 = int_to_ptr.vmem [resolvable:$true] %s1843_s2 }
 0x24b   :  { %1545 = vmatpush2.bf16.msra.mxu0 %v2295_v61  ;;  %v1117_v61 = vrot.slane %v1108_v27, %v137_v12  ;;  %s2437_s18 = scalar_lea.vmem %s1844_s2, 32  ;;  %p2442_p7 = scmp.lt.s32.totalorder %s1844_s2, %s1844_s2 }
 0x24c   :  { %1546 = vmatprep.subr.bf16.mxu0 %v2299_v30  ;;  %p2438_p6 = scmp.ne.s32.totalorder %s1844_s2, %s2437_s18  ;;  %p2443_p8 = scmp.lt.s32.totalorder %s2437_s18, %s2437_s18 }
 0x24d   :  { %1586 = vmatpush2.bf16.msra.mxu1 %v2298_v31 }
 0x24e   :  { %1587 = vmatprep.subr.bf16.mxu1 %v2302_v40  ;;  %p2444_p9 = por %p2443_p8, %p2442_p7 }
 0x24f   :  { %1547 = vmatpush2.bf16.msra.mxu0 %v2301_v33 }
 0x250   :  { %1548 = vmatprep.subr.bf16.mxu0 %v2305_v34  ;;  %p2445_p10 = pnand %p2444_p9, %p2438_p6 }
 0x251   :  { %1588 = vmatpush2.bf16.msra.mxu1 %v2304_v62 }
 0x252   :  { %1589 = vmatprep.subr.bf16.mxu1 %v2308_v36 }
 0x253   :  { %1549 = vmatpush2.bf16.msra.mxu0 %v2307_v35 }
 0x254   :  { %1550 = vmatprep.subr.bf16.mxu0 %v2311_v37 }
 0x255   :  { %1590 = vmatpush2.bf16.msra.mxu1 %v2310_v17 }
 0x256   :  { %1591 = vmatprep.subr.bf16.mxu1 %v2314_v38 }
 0x257   :  { %1551 = vmatpush2.bf16.msra.mxu0 %v2313_v63 }
 0x258   :  { %1602 = vmatprep.subr.bf16.mxu0 %v2319_v15 }
 0x259   :  { %1592 = vmatpush2.bf16.msra.mxu1 %v2316_v1 }
 0x25a   :  { %1553 = vmatmul.mubr.bf16.vlgmr.msra.gmra.mxu0 %v1023_v42  ;;  %2071 = vmatprep.subr.bf16.mxu1 %v2341_v55 }
 0x25b   :  { %1603 = vmatpush1.bf16.msra.mxu0 %v2317_v18  ;;  %1634 = vmatprep.mubr.bf16.mxu0 %v2576_v0  ;;  %v2335_v0 = vld [vmem:[#allocation2 + $0x210] ss:$8 sps:$4 sm:$0xff]  }
 0x25c   :  { %1594 = vmatmul.mubr.bf16.vlgmr.msra.gmra.mxu1 %v1025_v43  ;;  %1604 = vmatprep.subr.bf16.mxu0 %v2322_v44 }
 0x25d   :  { %2072 = vmatpush3.bf16.msra.mxu1 %v2342_v56 }
 0x25e   :  { %2073 = vmatprep.subr.bf16.mxu1 %v2343_v59 }
 0x25f   :  { %1605 = vmatpush1.bf16.msra.mxu0 %v2320_v45 }
 0x260   :  { %1606 = vmatprep.subr.bf16.mxu0 %v2325_v4 }
 0x261   :  { %2074 = vmatpush3.bf16.msra.mxu1 %v2344_v60 }
 0x262   :  { %2075 = vmatprep.subr.bf16.mxu1 %v2345_v2 }
 0x263   :  { %1607 = vmatpush1.bf16.msra.mxu0 %v2323_v13 }
 0x264   :  { %1608 = vmatprep.subr.bf16.mxu0 %v2328_v32 }
 0x265   :  { %2076 = vmatpush3.bf16.msra.mxu1 %v2346_v3 }
 0x266   :  { %2077 = vmatprep.subr.bf16.mxu1 %v2347_v57 }
 0x267   :  { %1609 = vmatpush1.bf16.msra.mxu0 %v2326_v5 }
 0x268   :  { %1610 = vmatprep.subr.bf16.mxu0 %v2331_v19 }
 0x269   :  { %2078 = vmatpush3.bf16.msra.mxu1 %v2348_v58 }
 0x26a   :  { %2079 = vmatprep.subr.bf16.mxu1 %v2349_v6 }
 0x26b   :  { %1611 = vmatpush1.bf16.msra.mxu0 %v2329_v46 }
 0x26c   :  { %1612 = vmatprep.subr.bf16.mxu0 %v2334_v49 }
 0x26d   :  { %2080 = vmatpush3.bf16.msra.mxu1 %v2350_v29 }
 0x26e   :  { %2081 = vmatprep.subr.bf16.mxu1 %v2351_v7 }
 0x26f   :  { %1613 = vmatpush1.bf16.msra.mxu0 %v2332_v50 }
 0x270   :  { %1614 = vmatprep.subr.bf16.mxu0 %v2337_v51 }
 0x271   :  { %2082 = vmatpush3.bf16.msra.mxu1 %v2352_v11 }
 0x272   :  { %2083 = vmatprep.subr.bf16.mxu1 %v2353_v47 }
 0x273   :  { %1615 = vmatpush1.bf16.msra.mxu0 %v2335_v0 }
 0x274   :  { %1616 = vmatprep.subr.bf16.mxu0 %v2340_v52 }
 0x275   :  { %2084 = vmatpush3.bf16.msra.mxu1 %v2354_v48 }
 0x276   :  { %2085 = vmatprep.subr.bf16.mxu1 %v2355_v8 }
 0x277   :  { %1617 = vmatpush1.bf16.msra.mxu0 %v2338_v53 }
 0x279   :  { %2086 = vmatpush3.bf16.msra.mxu1 %v2356_v14 }
 0x27a   :  { %1635 = vmatmul.mubr.bf16.vlgmr.msra.gmra.mxu0 %v1027_v54 }
 0x31a   :  { %v1554_v20 = vpop.f32.mrf.mxu0 }
 0x31b   :  { %v1555_v30 = vadd.f32 %v1554_v20, %v1113_v28 }
 0x31c   :  { %v1556_v21 = vpop.f32.mrf.mxu0  ;;  %v1595_v22 = vpop.f32.mrf.mxu1 }
 0x31d   :  { %v1557_v31 = vadd.f32 %v1556_v21, %v1117_v61  ;;  %v1596_v40 = vadd.f32 %v1595_v22, %v1555_v30 }
 0x31e   :  { %v1558_v23 = vpop.f32.mrf.mxu0  ;;  %v1597_v24 = vpop.f32.mrf.mxu1 }
 0x31f   :  { %v1598_v62 = vadd.f32 %v1597_v24, %v1557_v31 }
 0x320   :  { %v1559_v25 = vpop.f32.mrf.mxu0  ;;  %v1599_v26 = vpop.f32.mrf.mxu1 }
 0x322   :  { %v1600_v39 = vpop.f32.mrf.mxu1 }
 0x33a   :  { %v1636_v33 = vpop.f32.mrf.mxu0 }
 0x33b   :  { %v1637_v34 = vadd.f32 %v1636_v33, %v1596_v40 }
 0x33c   :  { %v1638_v35 = vpop.f32.mrf.mxu0 }
 0x33d   :  { %v1639_v36 = vadd.f32 %v1638_v35, %v1598_v62  ;;  %v1643_v37 = vmax.f32 %v1637_v34, 0.0 }
 0x33e   :  { %v1640_v17 = vpop.f32.mrf.mxu0 }
 0x33f   :  { %v1644_v38 = vmax.f32 %v1639_v36, 0.0  ;;  %v1645_v1 = vpack.c.bf16 %v1643_v37, %v1643_v37 }
 0x340   :  { %v1641_v63 = vpop.f32.mrf.mxu0 }
 0x341   :  { %v1646_v15 = vpack.c.bf16 %v1644_v38, %v1644_v38 }
 0x343   :  { %1814 = vmatprep.mubr.bf16.mxu1 %v1646_v15 }
 0x344   :  { %1815 = vmatmul.mubr.bf16.vlgmr.msra.gmra.mxu1 %v1645_v1 }
 0x345   :  { %2448 = shalt.err (!%p2445_p10)
}
 0x346   :  { %1846 = dma.vmem_to_hbm [thread:$0]  %s1844_s2, 32, %s2857_s11, [#allocation12]  }
 0x347   :  { %s2457_s21 = scalar_lea.vmem %s1831_s17, 512  ;;  %p2462_p12 = scmp.lt.s32.totalorder %s1831_s17, %s1831_s17 }
 0x348   :  { %p2458_p11 = scmp.ne.s32.totalorder %s1831_s17, %s2457_s21  ;;  %p2463_p13 = scmp.lt.s32.totalorder %s2457_s21, %s2457_s21 }
 0x34a   :  { %p2464_p0 = por %p2463_p13, %p2462_p12 }
 0x34c   :  { %p2465_p1 = pnand %p2464_p0, %p2458_p11 }
 0x34e   :  { %2468 = shalt.err (!%p2465_p1)
}
 0x34f   :  { %s2582_s22 = smov 128   ;;  %s2583_s3 = smov 8  }
 0x350   :  { %1836 = dma.vmem_to_hbm [thread:$0]  %s1831_s17, 512, %s2856_s10, [#allocation6], %s2582_s22, %s2582_s22, %s2583_s3  }
 0x351   :  { %s2584_s25 = smov [#allocation13]  }
 0x352   :  { %s1853_s1 = sshll.u32 %s2584_s25, 4  ;;  %s1854_s1 = int_to_ptr.vmem [resolvable:$true] %s1853_s1 }
 0x353   :  { %s2477_s7 = scalar_lea.vmem %s1854_s1, 128  ;;  %p2482_p3 = scmp.lt.s32.totalorder %s1854_s1, %s1854_s1 }
 0x354   :  { %p2478_p2 = scmp.ne.s32.totalorder %s1854_s1, %s2477_s7  ;;  %p2483_p4 = scmp.lt.s32.totalorder %s2477_s7, %s2477_s7 }
 0x356   :  { %p2484_p5 = por %p2483_p4, %p2482_p3 }
 0x358   :  { %p2485_p6 = pnand %p2484_p5, %p2478_p2 }
 0x35a   :  { %2488 = shalt.err (!%p2485_p6)
}
 0x35b   :  { %1856 = dma.vmem_to_hbm [thread:$0]  %s1854_s1, 128, %s2858_s12, [#allocation12]   ;;  %v2045_v10 = vld [vmem:[%s2854_s8] ss:$0 sm:$0xff] }
 0x35c   :  { %s2585_s10 = smov [#allocation14]  }
 0x35d   :  { %s1863_s28 = sshll.u32 %s2585_s10, 4  ;;  %s1864_s28 = int_to_ptr.vmem [resolvable:$true] %s1863_s28 }
 0x35e   :  { %s2497_s29 = scalar_lea.vmem %s1864_s28, 32  ;;  %p2502_p8 = scmp.lt.s32.totalorder %s1864_s28, %s1864_s28 }
 0x35f   :  { %p2498_p7 = scmp.ne.s32.totalorder %s1864_s28, %s2497_s29  ;;  %p2503_p9 = scmp.lt.s32.totalorder %s2497_s29, %s2497_s29 }
 0x361   :  { %p2504_p10 = por %p2503_p9, %p2502_p8 }
 0x363   :  { %p2505_p11 = pnand %p2504_p10, %p2498_p7 }
 0x404   :  { %v2087_v9 = vpop.f32.mrf.mxu1 }
 0x406   :  { %v2088_v12 = vpop.f32.mrf.mxu1 }
 0x407   :  { %v2089_v16 = vadd.f32 %v2088_v12, %v2087_v9 }
 0x408   :  { %v2090_v18 = vpop.f32.mrf.mxu1 }
 0x409   :  { %v1817_v41 = vadd.f32 %v2089_v16, %v2045_v10 }
 0x40a   :  { %v2091_v42 = vpop.f32.mrf.mxu1 }
 0x40b   :  { %1822 = vst [vmem:[#allocation14] sm:$0x3] %v1817_v41 }
 0x40c   :  { %2508 = shalt.err (!%p2505_p11)
}
 0x40d   :  { %1866 = dma.vmem_to_hbm [thread:$0]  %s1864_s28, 32, %s2859_s13, [#allocation15]  }
 0x40e   :  { %2523 = dma.done.wait [#allocation6], 512  }
 0x40f   :  { %2524 = vsyncadd [#allocation6], 4294966784 }
 0x410   :  { %2525 = dma.done.wait [#allocation12], 160  }
 0x411   :  { %2526 = vsyncadd [#allocation12], 4294967136 }
 0x412   :  { %2527 = dma.done.wait [#allocation15], 32  }
 0x413   :  { %2528 = vsyncadd [#allocation15], 4294967264 }
 0x414   :  { %1881 = vsyncpa [#allocation5], 1 }
 0x415   :  { %1882 = vsyncpa [#allocation8], 1 }
 0x416   :  { %1883 = vsyncpa [#allocation6], 1 }
 0x417   :  { %1884 = vsyncpa [#allocation12], 1 }
 0x418   :  { %1885 = vsyncpa [#allocation15], 1 }
 0x419   :  { %1886 = vsyncmov [#allocation3] }
 0x41c   :  { %s1887_s8 = vpop.sfrf %1886 }
 0x41d   :  { %p2062_p12 = scmp.ne.s32.totalorder %s1887_s8, 0 }
 0x41f   :  { %1891 = shalt.err (%p2062_p12)  }

</bundles_post_ra>
